<compile_context>
chip_gen: v7x
topology: tpu7x:2x2x1
jax: 0.10.0
libtpu: 0.0.40
codegen_flags: <defaults>
</compile_context>

<pallas_src>
import math
import functools

import jax
import jax.numpy as jnp
from jax import lax
from jax.experimental import pallas as pl
from jax.experimental.pallas import tpu as pltpu

# Hyper-parameters (small, consistent with RelMultiHeadAttn.__init__)
N_HEAD = 4
D_MODEL = 32
D_HEAD = 8
LN_EPS = 1e-5                    # torch.nn.LayerNorm default
MXU_DTYPE = jnp.bfloat16         # MXU operand dtype (accumulation stays f32)


# ---------------------------------------------------------------------------
# In-kernel exact _rel_shift (zero_triu=False) on the last two dims, built from
# full-tile rolls + selects (no pad/reshape, no gathers, no HBM round trip).
#
# Derivation (qlen == klen == T):
#   out[i, j] = X[i, j + T-1-i]           for j <= i
#   out[i, j] = 0                         for j == i+1
#   out[i, j] = X[i+1, j-i-2]             for j >= i+2     (torch's wrapped values)
# which equals  where(j<=i, S, where(j==i+1, 0, roll_rows_up(S)))  with the skew
#   S[i, j] = X[i, (j - (i+1)) mod T]
# realized as log2(T) conditional circular rolls along the lane axis (XLU slot,
# i.e. off the VALU critical path).
# ---------------------------------------------------------------------------
def _rel_shift_tile(bd):
    t = bd.shape[-1]
    row = lax.broadcasted_iota(jnp.int32, bd.shape, bd.ndim - 2)
    col = lax.broadcasted_iota(jnp.int32, bd.shape, bd.ndim - 1)
    amt = row + 1                       # per-row circular shift amount (mod t)
    skew = bd
    v = 1
    while v < t:                        # static log2(t) masked rolls
        skew = jnp.where((amt & v) != 0, jnp.roll(skew, v, axis=-1), skew)
        v *= 2
    skew_next = jnp.roll(skew, -1, axis=-2)        # skew[..., i+1, :] (wraps)
    zero = jnp.zeros((), bd.dtype)
    return jnp.where(col <= row, skew,
                     jnp.where(col == row + 1, zero, skew_next))


# ---------------------------------------------------------------------------
# Fused kernel: projections + scores + rel-shift + softmax + AV + o_net +
# residual + LayerNorm, for one batch block per grid step.
# ---------------------------------------------------------------------------
def _fused_rel_attn_kernel(q_ref, r_ref, wqkv_ref, wo_ref, g_ref, b_ref, out_ref,
                           *, bblk, n_head, d_head):
    T, D = r_ref.shape
    HD = n_head * d_head
    cdt = MXU_DTYPE

    # Single fused projection for the whole batch block PLUS the rel-pos rows:
    # [(bblk+1)*T, D] @ [D, 3*HD].  r's Q/V columns are wasted MACs (tiny) but
    # the 3*HD-wide weight tile is pushed to the MXU only once per grid step.
    x_all = jnp.concatenate([q_ref[b] for b in range(bblk)] + [r_ref[...]],
                            axis=0).astype(jnp.float32)               # [(bblk+1)*T, D]
    qkv_all = jnp.dot(x_all.astype(cdt), wqkv_ref[...],
                      preferred_element_type=jnp.float32)             # [(bblk+1)*T, 3*HD]
    qkv = qkv_all[:bblk * T]                                          # batch-block rows
    r_proj = qkv_all[bblk * T:]                                       # rel-pos rows
    x2 = x_all[:bblk * T]                                             # residual (f32)

    # Head-batched operands.  K and R are stacked along the row axis so the AC
    # (content) and BD (position) scores come out of one matmul per (b, h).
    q_l, kr_l, v_l = [], [], []
    for b in range(bblk):
        rows = slice(b * T, (b + 1) * T)
        for h in range(n_head):
            cq = slice(h * d_head, (h + 1) * d_head)
            ck = slice(HD + h * d_head, HD + (h + 1) * d_head)
            cv = slice(2 * HD + h * d_head, 2 * HD + (h + 1) * d_head)
            q_l.append(qkv[rows, cq])
            kr_l.append(jnp.concatenate([qkv[rows, ck], r_proj[:, ck]], axis=0))
            v_l.append(qkv[rows, cv])
    qh = jnp.stack(q_l, axis=0).astype(cdt)                           # [N, T, dh]
    krh = jnp.stack(kr_l, axis=0).astype(cdt)                         # [N, 2T, dh]
    vh = jnp.stack(v_l, axis=0).astype(cdt)                           # [N, T, dh]

    s2 = jnp.einsum("ntd,nsd->nts", qh, krh,
                    preferred_element_type=jnp.float32)               # [N, T, 2T]
    # scale (1/sqrt(d_head) * scale) is already folded into the Q weight columns.
    scores = s2[:, :, :T] + _rel_shift_tile(s2[:, :, T:])             # [N, T, T]

    # Row softmax: exp on the EUP, normalization via approx reciprocal (EUP slot).
    m = jnp.max(scores, axis=-1, keepdims=True)
    e = jnp.exp(scores - m)
    p = e * pl.reciprocal(jnp.sum(e, axis=-1, keepdims=True), approx=True)

    # Attention * V (head-batched), then regroup heads into one lane-dense
    # [bblk*T, HD] register tile feeding a single output-projection matmul.
    av = jnp.einsum("nts,nsd->ntd", p.astype(cdt), vh,
                    preferred_element_type=jnp.float32)               # [N, T, dh]
    av_all = jnp.concatenate(
        [jnp.concatenate([av[b * n_head + h] for h in range(n_head)], axis=-1)
         for b in range(bblk)],
        axis=0)                                                       # [bblk*T, HD]

    # Output projection + residual + LayerNorm (all f32).
    o = jnp.dot(av_all.astype(cdt), wo_ref[...],
                preferred_element_type=jnp.float32)                   # [bblk*T, D]
    o = o + x2                                                        # residual
    mu = jnp.mean(o, axis=-1, keepdims=True)
    var = jnp.mean((o - mu) ** 2, axis=-1, keepdims=True)
    o = (o - mu) * lax.rsqrt(var + LN_EPS)
    o = o * g_ref[...] + b_ref[...]
    for b in range(bblk):
        out_ref[b] = o[b * T:(b + 1) * T, :].astype(out_ref.dtype)


def _pick_batch_block(batch):
    # Largest divisor of batch (capped) -> more work per sequential grid step,
    # amortizing per-step pipeline/DMA-setup overhead; cap bounds static unroll.
    bb = 1
    for cand in range(1, batch + 1):
        if batch % cand == 0 and cand <= 8:
            bb = cand
    return bb


# ---------------------------------------------------------------------------
# Wrapper
# ---------------------------------------------------------------------------
def rel_multi_head_attn_forward(q, r, params, attn_mask=None, scale=1.0):
    assert attn_mask is None, "attn_mask not supported in this synthetic kernel"
    B, T, D = q.shape
    assert r.shape == (T, D)
    HD = N_HEAD * D_HEAD

    # Fold the softmax scale (self.scale * scale) into the Q projection columns,
    # fuse Q/K/V weights into a single [D, 3*HD] operand, and pre-cast the MXU
    # weight operands to bf16 (halves weight DMA; accumulation stays f32).
    scale_total = (1.0 / math.sqrt(D_HEAD)) * float(scale)
    w_qkv = jnp.concatenate(
        [params["wq"] * scale_total, params["wk"], params["wv"]],
        axis=1).astype(MXU_DTYPE)
    w_o = params["wo"].astype(MXU_DTYPE)

    bblk = _pick_batch_block(B)
    grid = (B // bblk,)

    flops = int(2 * (B + B // bblk) * T * D * 3 * HD         # fused QKV (+ r rows)
                + 2 * B * N_HEAD * T * (2 * T) * D_HEAD      # AC|BD scores
                + 2 * B * N_HEAD * T * T * D_HEAD            # attention * V
                + 2 * B * T * HD * D)                        # output projection
    transcendentals = int(B * N_HEAD * T * T + 2 * B * T)
    bytes_accessed = int(4 * (q.size + r.size + 2 * D + B * T * D)
                         + 2 * (w_qkv.size + w_o.size))

    kernel = functools.partial(_fused_rel_attn_kernel, bblk=bblk,
                               n_head=N_HEAD, d_head=D_HEAD)
    return pl.pallas_call(
        kernel,
        grid=grid,
        in_specs=[
            pl.BlockSpec((bblk, T, D), lambda i: (i, 0, 0)),      # q (batch block)
            pl.BlockSpec((T, D), lambda i: (0, 0)),               # r
            pl.BlockSpec((D, 3 * HD), lambda i: (0, 0)),          # fused Wqkv (bf16)
            pl.BlockSpec((HD, D), lambda i: (0, 0)),              # Wo (bf16)
            pl.BlockSpec((1, D), lambda i: (0, 0)),               # LayerNorm gamma
            pl.BlockSpec((1, D), lambda i: (0, 0)),               # LayerNorm beta
        ],
        out_specs=pl.BlockSpec((bblk, T, D), lambda i: (i, 0, 0)),
        out_shape=jax.ShapeDtypeStruct((B, T, D), q.dtype),
        compiler_params=pltpu.CompilerParams(
            dimension_semantics=("parallel",),
            # Tiles are tiny here; leave headroom under v7x's 64 MiB physical
            # VMEM when T / the batch block are scaled up.
            vmem_limit_bytes=32 * 1024 * 1024,
        ),
        cost_estimate=pl.CostEstimate(flops=flops,
                                      transcendentals=transcendentals,
                                      bytes_accessed=bytes_accessed),
    )(q, r, w_qkv, w_o, params["gamma"], params["beta"])


# ---------------------------------------------------------------------------
# Pure-JAX f32 reference (exact torch pad/view _rel_shift) for a sanity check
# ---------------------------------------------------------------------------
def _rel_shift_ref(x):
    B, H, qlen, klen = x.shape
    zero_pad = jnp.zeros((B, H, qlen, 1), x.dtype)
    xp = jnp.concatenate([zero_pad, x], axis=-1)          # [B, H, q, k+1]
    xp = xp.reshape(B, H, klen + 1, qlen)
    return xp[:, :, 1:, :].reshape(B, H, qlen, klen)


def ref_forward(q, r, params, scale=1.0):
    wq, wk, wv, wo = params["wq"], params["wk"], params["wv"], params["wo"]
    gamma, beta = params["gamma"], params["beta"]
    B, T, D = q.shape
    hq = (q @ wq).reshape(B, T, N_HEAD, D_HEAD)
    hk = (q @ wk).reshape(B, T, N_HEAD, D_HEAD)
    hv = (q @ wv).reshape(B, T, N_HEAD, D_HEAD)
    rk = (r @ wk).reshape(T, N_HEAD, D_HEAD)
    AC = jnp.einsum("bihd,bjhd->bhij", hq, hk)
    BD = jnp.einsum("bihd,jhd->bhij", hq, rk)
    BDs = _rel_shift_ref(BD)
    s = (AC + BDs) * ((1.0 / math.sqrt(D_HEAD)) * scale)
    p = jax.nn.softmax(s, axis=-1)
    av = jnp.einsum("bhij,bjhd->bihd", p, hv).reshape(B, T, N_HEAD * D_HEAD)
    o = av @ wo + q
    mu = o.mean(-1, keepdims=True)
    var = ((o - mu) ** 2).mean(-1, keepdims=True)
    return (o - mu) / jnp.sqrt(var + LN_EPS) * gamma + beta


if __name__ == "__main__":
    key = jax.random.PRNGKey(0)
    B, T = 2, 8
    HD = N_HEAD * D_HEAD
    ks = jax.random.split(key, 6)

    def lin_init(k, fan_in, shape):
        bound = 1.0 / math.sqrt(fan_in)
        return jax.random.uniform(k, shape, jnp.float32, -bound, bound)

    params = dict(
        wq=lin_init(ks[0], D_MODEL, (D_MODEL, HD)),
        wk=lin_init(ks[1], D_MODEL, (D_MODEL, HD)),
        wv=lin_init(ks[2], D_MODEL, (D_MODEL, HD)),
        wo=lin_init(ks[3], HD, (HD, D_MODEL)),
        gamma=jnp.ones((1, D_MODEL), jnp.float32),   # LayerNorm weight init
        beta=jnp.zeros((1, D_MODEL), jnp.float32),   # LayerNorm bias init
    )
    q = jax.random.normal(ks[4], (B, T, D_MODEL), jnp.float32)
    r = jax.random.normal(ks[5], (T, D_MODEL), jnp.float32)

    out = rel_multi_head_attn_forward(q, r, params, attn_mask=None, scale=1.0)
    out = jax.block_until_ready(out)
    assert out.shape == (B, T, D_MODEL)

    ref = ref_forward(q, r, params, scale=1.0)
    # bf16 MXU inputs + approx reciprocal vs. the pure-f32 reference.
    if not jnp.allclose(out, ref, atol=2e-2, rtol=2e-2):
        raise SystemExit("kernel output mismatch vs pure-JAX reference")
    print("KERNEL_OK")
</pallas_src>

<mosaic_0001>
module attributes {stable_mosaic.version = 11 : i64} {
  func.func @_fused_rel_attn_kernel(%arg0: i32, %arg1: memref<2x8x32xf32, #tpu.memory_space<vmem>>, %arg2: memref<8x32xf32, #tpu.memory_space<vmem>>, %arg3: memref<32x96xbf16, #tpu.memory_space<vmem>>, %arg4: memref<32x32xbf16, #tpu.memory_space<vmem>>, %arg5: memref<1x32xf32, #tpu.memory_space<vmem>>, %arg6: memref<1x32xf32, #tpu.memory_space<vmem>>, %arg7: memref<2x8x32xf32, #tpu.memory_space<vmem>>) attributes {dimension_semantics = [#tpu.dimension_semantics<parallel>], iteration_bounds = array<i64: 1>, scalar_prefetch = 0 : i64, scratch_operands = 0 : i64, tpu.core_type = #tpu.core_type<tc>, window_params = [{transform_indices = @transform_0, window_bounds = array<i64: 2, 8, 32>}, {pipeline_mode = #tpu.pipeline_mode<synchronous>, transform_indices = @transform_1, window_bounds = array<i64: 8, 32>}, {pipeline_mode = #tpu.pipeline_mode<synchronous>, transform_indices = @transform_2, window_bounds = array<i64: 32, 96>}, {pipeline_mode = #tpu.pipeline_mode<synchronous>, transform_indices = @transform_3, window_bounds = array<i64: 32, 32>}, {pipeline_mode = #tpu.pipeline_mode<synchronous>, transform_indices = @transform_4, window_bounds = array<i64: 1, 32>}, {pipeline_mode = #tpu.pipeline_mode<synchronous>, transform_indices = @transform_5, window_bounds = array<i64: 1, 32>}, {transform_indices = @transform_6, window_bounds = array<i64: 2, 8, 32>}]} {
    %c0 = arith.constant 0 : index
    %c0_0 = arith.constant 0 : index
    %c0_1 = arith.constant 0 : index
    %0 = vector.load %arg1[%c0, %c0_0, %c0_1] : memref<2x8x32xf32, #tpu.memory_space<vmem>>, vector<1x8x32xf32>
    %1 = vector.shape_cast %0 : vector<1x8x32xf32> to vector<8x32xf32>
    %c1 = arith.constant 1 : index
    %c0_2 = arith.constant 0 : index
    %c0_3 = arith.constant 0 : index
    %2 = vector.load %arg1[%c1, %c0_2, %c0_3] : memref<2x8x32xf32, #tpu.memory_space<vmem>>, vector<1x8x32xf32>
    %3 = vector.shape_cast %2 : vector<1x8x32xf32> to vector<8x32xf32>
    %c0_4 = arith.constant 0 : index
    %c0_5 = arith.constant 0 : index
    %4 = vector.load %arg2[%c0_4, %c0_5] : memref<8x32xf32, #tpu.memory_space<vmem>>, vector<8x32xf32>
    %5 = tpu.concatenate %1, %3, %4 in 0 : vector<8x32xf32>, vector<8x32xf32>, vector<8x32xf32> -> vector<24x32xf32>
    %6 = arith.truncf %5 : vector<24x32xf32> to vector<24x32xbf16>
    %c0_6 = arith.constant 0 : index
    %c0_7 = arith.constant 0 : index
    %7 = vector.load %arg3[%c0_6, %c0_7] : memref<32x96xbf16, #tpu.memory_space<vmem>>, vector<32x96xbf16>
    %cst = arith.constant dense<0.000000e+00> : vector<24x96xf32>
    %8 = tpu.matmul %6, %7, %cst {dimension_numbers = #tpu.dot_dimension_numbers<[1], [0], [0], [1], [0, 0, 1, 1], [], []>} : vector<24x32xbf16>, vector<32x96xbf16>, vector<24x96xf32> -> vector<24x96xf32>
    %9 = vector.extract_strided_slice %8 {offsets = [0, 0], sizes = [16, 96], strides = [1, 1]} : vector<24x96xf32> to vector<16x96xf32>
    %10 = vector.extract_strided_slice %8 {offsets = [16, 0], sizes = [8, 96], strides = [1, 1]} : vector<24x96xf32> to vector<8x96xf32>
    %11 = vector.extract_strided_slice %5 {offsets = [0, 0], sizes = [16, 32], strides = [1, 1]} : vector<24x32xf32> to vector<16x32xf32>
    %12 = vector.extract_strided_slice %9 {offsets = [0, 0], sizes = [8, 8], strides = [1, 1]} : vector<16x96xf32> to vector<8x8xf32>
    %13 = vector.extract_strided_slice %9 {offsets = [0, 32], sizes = [8, 8], strides = [1, 1]} : vector<16x96xf32> to vector<8x8xf32>
    %14 = vector.extract_strided_slice %10 {offsets = [0, 32], sizes = [8, 8], strides = [1, 1]} : vector<8x96xf32> to vector<8x8xf32>
    %15 = tpu.concatenate %13, %14 in 0 : vector<8x8xf32>, vector<8x8xf32> -> vector<16x8xf32>
    %16 = vector.extract_strided_slice %9 {offsets = [0, 64], sizes = [8, 8], strides = [1, 1]} : vector<16x96xf32> to vector<8x8xf32>
    %17 = vector.extract_strided_slice %9 {offsets = [0, 8], sizes = [8, 8], strides = [1, 1]} : vector<16x96xf32> to vector<8x8xf32>
    %18 = vector.extract_strided_slice %9 {offsets = [0, 40], sizes = [8, 8], strides = [1, 1]} : vector<16x96xf32> to vector<8x8xf32>
    %19 = vector.extract_strided_slice %10 {offsets = [0, 40], sizes = [8, 8], strides = [1, 1]} : vector<8x96xf32> to vector<8x8xf32>
    %20 = tpu.concatenate %18, %19 in 0 : vector<8x8xf32>, vector<8x8xf32> -> vector<16x8xf32>
    %21 = vector.extract_strided_slice %9 {offsets = [0, 72], sizes = [8, 8], strides = [1, 1]} : vector<16x96xf32> to vector<8x8xf32>
    %22 = vector.extract_strided_slice %9 {offsets = [0, 16], sizes = [8, 8], strides = [1, 1]} : vector<16x96xf32> to vector<8x8xf32>
    %23 = vector.extract_strided_slice %9 {offsets = [0, 48], sizes = [8, 8], strides = [1, 1]} : vector<16x96xf32> to vector<8x8xf32>
    %24 = vector.extract_strided_slice %10 {offsets = [0, 48], sizes = [8, 8], strides = [1, 1]} : vector<8x96xf32> to vector<8x8xf32>
    %25 = tpu.concatenate %23, %24 in 0 : vector<8x8xf32>, vector<8x8xf32> -> vector<16x8xf32>
    %26 = vector.extract_strided_slice %9 {offsets = [0, 80], sizes = [8, 8], strides = [1, 1]} : vector<16x96xf32> to vector<8x8xf32>
    %27 = vector.extract_strided_slice %9 {offsets = [0, 24], sizes = [8, 8], strides = [1, 1]} : vector<16x96xf32> to vector<8x8xf32>
    %28 = vector.extract_strided_slice %9 {offsets = [0, 56], sizes = [8, 8], strides = [1, 1]} : vector<16x96xf32> to vector<8x8xf32>
    %29 = vector.extract_strided_slice %10 {offsets = [0, 56], sizes = [8, 8], strides = [1, 1]} : vector<8x96xf32> to vector<8x8xf32>
    %30 = tpu.concatenate %28, %29 in 0 : vector<8x8xf32>, vector<8x8xf32> -> vector<16x8xf32>
    %31 = vector.extract_strided_slice %9 {offsets = [0, 88], sizes = [8, 8], strides = [1, 1]} : vector<16x96xf32> to vector<8x8xf32>
    %32 = vector.extract_strided_slice %9 {offsets = [8, 0], sizes = [8, 8], strides = [1, 1]} : vector<16x96xf32> to vector<8x8xf32>
    %33 = vector.extract_strided_slice %9 {offsets = [8, 32], sizes = [8, 8], strides = [1, 1]} : vector<16x96xf32> to vector<8x8xf32>
    %34 = vector.extract_strided_slice %10 {offsets = [0, 32], sizes = [8, 8], strides = [1, 1]} : vector<8x96xf32> to vector<8x8xf32>
    %35 = tpu.concatenate %33, %34 in 0 : vector<8x8xf32>, vector<8x8xf32> -> vector<16x8xf32>
    %36 = vector.extract_strided_slice %9 {offsets = [8, 64], sizes = [8, 8], strides = [1, 1]} : vector<16x96xf32> to vector<8x8xf32>
    %37 = vector.extract_strided_slice %9 {offsets = [8, 8], sizes = [8, 8], strides = [1, 1]} : vector<16x96xf32> to vector<8x8xf32>
    %38 = vector.extract_strided_slice %9 {offsets = [8, 40], sizes = [8, 8], strides = [1, 1]} : vector<16x96xf32> to vector<8x8xf32>
    %39 = vector.extract_strided_slice %10 {offsets = [0, 40], sizes = [8, 8], strides = [1, 1]} : vector<8x96xf32> to vector<8x8xf32>
    %40 = tpu.concatenate %38, %39 in 0 : vector<8x8xf32>, vector<8x8xf32> -> vector<16x8xf32>
    %41 = vector.extract_strided_slice %9 {offsets = [8, 72], sizes = [8, 8], strides = [1, 1]} : vector<16x96xf32> to vector<8x8xf32>
    %42 = vector.extract_strided_slice %9 {offsets = [8, 16], sizes = [8, 8], strides = [1, 1]} : vector<16x96xf32> to vector<8x8xf32>
    %43 = vector.extract_strided_slice %9 {offsets = [8, 48], sizes = [8, 8], strides = [1, 1]} : vector<16x96xf32> to vector<8x8xf32>
    %44 = vector.extract_strided_slice %10 {offsets = [0, 48], sizes = [8, 8], strides = [1, 1]} : vector<8x96xf32> to vector<8x8xf32>
    %45 = tpu.concatenate %43, %44 in 0 : vector<8x8xf32>, vector<8x8xf32> -> vector<16x8xf32>
    %46 = vector.extract_strided_slice %9 {offsets = [8, 80], sizes = [8, 8], strides = [1, 1]} : vector<16x96xf32> to vector<8x8xf32>
    %47 = vector.extract_strided_slice %9 {offsets = [8, 24], sizes = [8, 8], strides = [1, 1]} : vector<16x96xf32> to vector<8x8xf32>
    %48 = vector.extract_strided_slice %9 {offsets = [8, 56], sizes = [8, 8], strides = [1, 1]} : vector<16x96xf32> to vector<8x8xf32>
    %49 = vector.extract_strided_slice %10 {offsets = [0, 56], sizes = [8, 8], strides = [1, 1]} : vector<8x96xf32> to vector<8x8xf32>
    %50 = tpu.concatenate %48, %49 in 0 : vector<8x8xf32>, vector<8x8xf32> -> vector<16x8xf32>
    %51 = vector.extract_strided_slice %9 {offsets = [8, 88], sizes = [8, 8], strides = [1, 1]} : vector<16x96xf32> to vector<8x8xf32>
    %52 = vector.shape_cast %12 : vector<8x8xf32> to vector<1x8x8xf32>
    %53 = vector.shape_cast %17 : vector<8x8xf32> to vector<1x8x8xf32>
    %54 = vector.shape_cast %22 : vector<8x8xf32> to vector<1x8x8xf32>
    %55 = vector.shape_cast %27 : vector<8x8xf32> to vector<1x8x8xf32>
    %56 = vector.shape_cast %32 : vector<8x8xf32> to vector<1x8x8xf32>
    %57 = vector.shape_cast %37 : vector<8x8xf32> to vector<1x8x8xf32>
    %58 = vector.shape_cast %42 : vector<8x8xf32> to vector<1x8x8xf32>
    %59 = vector.shape_cast %47 : vector<8x8xf32> to vector<1x8x8xf32>
    %60 = tpu.concatenate %52, %53, %54, %55, %56, %57, %58, %59 in 0 : vector<1x8x8xf32>, vector<1x8x8xf32>, vector<1x8x8xf32>, vector<1x8x8xf32>, vector<1x8x8xf32>, vector<1x8x8xf32>, vector<1x8x8xf32>, vector<1x8x8xf32> -> vector<8x8x8xf32>
    %61 = arith.truncf %60 : vector<8x8x8xf32> to vector<8x8x8xbf16>
    %62 = vector.shape_cast %15 : vector<16x8xf32> to vector<1x16x8xf32>
    %63 = vector.shape_cast %20 : vector<16x8xf32> to vector<1x16x8xf32>
    %64 = vector.shape_cast %25 : vector<16x8xf32> to vector<1x16x8xf32>
    %65 = vector.shape_cast %30 : vector<16x8xf32> to vector<1x16x8xf32>
    %66 = vector.shape_cast %35 : vector<16x8xf32> to vector<1x16x8xf32>
    %67 = vector.shape_cast %40 : vector<16x8xf32> to vector<1x16x8xf32>
    %68 = vector.shape_cast %45 : vector<16x8xf32> to vector<1x16x8xf32>
    %69 = vector.shape_cast %50 : vector<16x8xf32> to vector<1x16x8xf32>
    %70 = tpu.concatenate %62, %63, %64, %65, %66, %67, %68, %69 in 0 : vector<1x16x8xf32>, vector<1x16x8xf32>, vector<1x16x8xf32>, vector<1x16x8xf32>, vector<1x16x8xf32>, vector<1x16x8xf32>, vector<1x16x8xf32>, vector<1x16x8xf32> -> vector<8x16x8xf32>
    %71 = arith.truncf %70 : vector<8x16x8xf32> to vector<8x16x8xbf16>
    %72 = vector.shape_cast %16 : vector<8x8xf32> to vector<1x8x8xf32>
    %73 = vector.shape_cast %21 : vector<8x8xf32> to vector<1x8x8xf32>
    %74 = vector.shape_cast %26 : vector<8x8xf32> to vector<1x8x8xf32>
    %75 = vector.shape_cast %31 : vector<8x8xf32> to vector<1x8x8xf32>
    %76 = vector.shape_cast %36 : vector<8x8xf32> to vector<1x8x8xf32>
    %77 = vector.shape_cast %41 : vector<8x8xf32> to vector<1x8x8xf32>
    %78 = vector.shape_cast %46 : vector<8x8xf32> to vector<1x8x8xf32>
    %79 = vector.shape_cast %51 : vector<8x8xf32> to vector<1x8x8xf32>
    %80 = tpu.concatenate %72, %73, %74, %75, %76, %77, %78, %79 in 0 : vector<1x8x8xf32>, vector<1x8x8xf32>, vector<1x8x8xf32>, vector<1x8x8xf32>, vector<1x8x8xf32>, vector<1x8x8xf32>, vector<1x8x8xf32>, vector<1x8x8xf32> -> vector<8x8x8xf32>
    %81 = arith.truncf %80 : vector<8x8x8xf32> to vector<8x8x8xbf16>
    "tpu.trace_start"() <{level = 10 : i32, message = "ntd,nsd->nts"}> : () -> ()
    %cst_8 = arith.constant dense<0.000000e+00> : vector<8x8x16xf32>
    %82 = tpu.matmul %61, %71, %cst_8 {dimension_numbers = #tpu.dot_dimension_numbers<[2], [2], [1], [1], [0, 0, 0, 1, 1, 1], [0], [0]>} : vector<8x8x8xbf16>, vector<8x16x8xbf16>, vector<8x8x16xf32> -> vector<8x8x16xf32>
    "tpu.trace_stop"() : () -> ()
    %83 = vector.extract_strided_slice %82 {offsets = [0, 0, 0], sizes = [8, 8, 8], strides = [1, 1, 1]} : vector<8x8x16xf32> to vector<8x8x8xf32>
    %84 = vector.extract_strided_slice %82 {offsets = [0, 0, 8], sizes = [8, 8, 8], strides = [1, 1, 1]} : vector<8x8x16xf32> to vector<8x8x8xf32>
    %85 = tpu.iota {dimensions = array<i32: 1>} : vector<8x8x8xi32>
    %86 = tpu.iota {dimensions = array<i32: 2>} : vector<8x8x8xi32>
    %c1_i32 = arith.constant 1 : i32
    %87 = vector.broadcast %c1_i32 : i32 to vector<8x8x8xi32>
    %88 = arith.addi %85, %87 : vector<8x8x8xi32>
    %c1_i32_9 = arith.constant 1 : i32
    %89 = vector.broadcast %c1_i32_9 : i32 to vector<8x8x8xi32>
    %90 = arith.andi %88, %89 : vector<8x8x8xi32>
    %c0_i32 = arith.constant 0 : i32
    %91 = vector.broadcast %c0_i32 : i32 to vector<8x8x8xi32>
    %92 = arith.cmpi ne, %90, %91 : vector<8x8x8xi32>
    %93 = vector.extract_strided_slice %84 {offsets = [0, 0, 7], sizes = [8, 8, 1], strides = [1, 1, 1]} : vector<8x8x8xf32> to vector<8x8x1xf32>
    %94 = vector.extract_strided_slice %84 {offsets = [0, 0, 0], sizes = [8, 8, 7], strides = [1, 1, 1]} : vector<8x8x8xf32> to vector<8x8x7xf32>
    %95 = tpu.concatenate %93, %94 in 2 : vector<8x8x1xf32>, vector<8x8x7xf32> -> vector<8x8x8xf32>
    %96 = arith.select %92, %95, %84 : vector<8x8x8xi1>, vector<8x8x8xf32>
    %c2_i32 = arith.constant 2 : i32
    %97 = vector.broadcast %c2_i32 : i32 to vector<8x8x8xi32>
    %98 = arith.andi %88, %97 : vector<8x8x8xi32>
    %c0_i32_10 = arith.constant 0 : i32
    %99 = vector.broadcast %c0_i32_10 : i32 to vector<8x8x8xi32>
    %100 = arith.cmpi ne, %98, %99 : vector<8x8x8xi32>
    %101 = vector.extract_strided_slice %96 {offsets = [0, 0, 6], sizes = [8, 8, 2], strides = [1, 1, 1]} : vector<8x8x8xf32> to vector<8x8x2xf32>
    %102 = vector.extract_strided_slice %96 {offsets = [0, 0, 0], sizes = [8, 8, 6], strides = [1, 1, 1]} : vector<8x8x8xf32> to vector<8x8x6xf32>
    %103 = tpu.concatenate %101, %102 in 2 : vector<8x8x2xf32>, vector<8x8x6xf32> -> vector<8x8x8xf32>
    %104 = arith.select %100, %103, %96 : vector<8x8x8xi1>, vector<8x8x8xf32>
    %c4_i32 = arith.constant 4 : i32
    %105 = vector.broadcast %c4_i32 : i32 to vector<8x8x8xi32>
    %106 = arith.andi %88, %105 : vector<8x8x8xi32>
    %c0_i32_11 = arith.constant 0 : i32
    %107 = vector.broadcast %c0_i32_11 : i32 to vector<8x8x8xi32>
    %108 = arith.cmpi ne, %106, %107 : vector<8x8x8xi32>
    %109 = vector.extract_strided_slice %104 {offsets = [0, 0, 4], sizes = [8, 8, 4], strides = [1, 1, 1]} : vector<8x8x8xf32> to vector<8x8x4xf32>
    %110 = vector.extract_strided_slice %104 {offsets = [0, 0, 0], sizes = [8, 8, 4], strides = [1, 1, 1]} : vector<8x8x8xf32> to vector<8x8x4xf32>
    %111 = tpu.concatenate %109, %110 in 2 : vector<8x8x4xf32>, vector<8x8x4xf32> -> vector<8x8x8xf32>
    %112 = arith.select %108, %111, %104 : vector<8x8x8xi1>, vector<8x8x8xf32>
    %113 = vector.extract_strided_slice %112 {offsets = [0, 1, 0], sizes = [8, 7, 8], strides = [1, 1, 1]} : vector<8x8x8xf32> to vector<8x7x8xf32>
    %114 = vector.extract_strided_slice %112 {offsets = [0, 0, 0], sizes = [8, 1, 8], strides = [1, 1, 1]} : vector<8x8x8xf32> to vector<8x1x8xf32>
    %115 = tpu.concatenate %113, %114 in 1 : vector<8x7x8xf32>, vector<8x1x8xf32> -> vector<8x8x8xf32>
    %116 = arith.cmpi sle, %86, %85 : vector<8x8x8xi32>
    %c1_i32_12 = arith.constant 1 : i32
    %117 = vector.broadcast %c1_i32_12 : i32 to vector<8x8x8xi32>
    %118 = arith.addi %85, %117 : vector<8x8x8xi32>
    %119 = arith.cmpi eq, %86, %118 : vector<8x8x8xi32>
    %cst_13 = arith.constant 0.000000e+00 : f32
    %120 = vector.broadcast %cst_13 : f32 to vector<8x8x8xf32>
    %121 = arith.select %119, %120, %115 : vector<8x8x8xi1>, vector<8x8x8xf32>
    %122 = arith.select %116, %112, %121 : vector<8x8x8xi1>, vector<8x8x8xf32>
    %123 = arith.addf %83, %122 : vector<8x8x8xf32>
    %cst_14 = arith.constant dense<0xFF800000> : vector<8x8xf32>
    %124 = vector.multi_reduction <maximumf>, %123, %cst_14 [2] : vector<8x8x8xf32> to vector<8x8xf32>
    %125 = vector.shape_cast %124 : vector<8x8xf32> to vector<8x8x1xf32>
    %126 = vector.broadcast %125 : vector<8x8x1xf32> to vector<8x8x8xf32>
    %127 = arith.subf %123, %126 : vector<8x8x8xf32>
    %128 = math.exp %127 : vector<8x8x8xf32>
    %cst_15 = arith.constant dense<0.000000e+00> : vector<8x8xf32>
    %129 = vector.multi_reduction <add>, %128, %cst_15 [2] : vector<8x8x8xf32> to vector<8x8xf32>
    %130 = vector.shape_cast %129 : vector<8x8xf32> to vector<8x8x1xf32>
    %131 = tpu.reciprocal %130 {approx = true} : vector<8x8x1xf32> -> vector<8x8x1xf32>
    %132 = vector.broadcast %131 : vector<8x8x1xf32> to vector<8x8x8xf32>
    %133 = arith.mulf %128, %132 : vector<8x8x8xf32>
    %134 = arith.truncf %133 : vector<8x8x8xf32> to vector<8x8x8xbf16>
    "tpu.trace_start"() <{level = 10 : i32, message = "nts,nsd->ntd"}> : () -> ()
    %cst_16 = arith.constant dense<0.000000e+00> : vector<8x8x8xf32>
    %135 = tpu.matmul %134, %81, %cst_16 {dimension_numbers = #tpu.dot_dimension_numbers<[2], [1], [1], [2], [0, 0, 0, 1, 1, 2], [0], [0]>} : vector<8x8x8xbf16>, vector<8x8x8xbf16>, vector<8x8x8xf32> -> vector<8x8x8xf32>
    "tpu.trace_stop"() : () -> ()
    %136 = vector.extract_strided_slice %135 {offsets = [0, 0, 0], sizes = [1, 8, 8], strides = [1, 1, 1]} : vector<8x8x8xf32> to vector<1x8x8xf32>
    %137 = vector.shape_cast %136 : vector<1x8x8xf32> to vector<8x8xf32>
    %138 = vector.extract_strided_slice %135 {offsets = [1, 0, 0], sizes = [1, 8, 8], strides = [1, 1, 1]} : vector<8x8x8xf32> to vector<1x8x8xf32>
    %139 = vector.shape_cast %138 : vector<1x8x8xf32> to vector<8x8xf32>
    %140 = vector.extract_strided_slice %135 {offsets = [2, 0, 0], sizes = [1, 8, 8], strides = [1, 1, 1]} : vector<8x8x8xf32> to vector<1x8x8xf32>
    %141 = vector.shape_cast %140 : vector<1x8x8xf32> to vector<8x8xf32>
    %142 = vector.extract_strided_slice %135 {offsets = [3, 0, 0], sizes = [1, 8, 8], strides = [1, 1, 1]} : vector<8x8x8xf32> to vector<1x8x8xf32>
    %143 = vector.shape_cast %142 : vector<1x8x8xf32> to vector<8x8xf32>
    %144 = tpu.concatenate %137, %139, %141, %143 in 1 : vector<8x8xf32>, vector<8x8xf32>, vector<8x8xf32>, vector<8x8xf32> -> vector<8x32xf32>
    %145 = vector.extract_strided_slice %135 {offsets = [4, 0, 0], sizes = [1, 8, 8], strides = [1, 1, 1]} : vector<8x8x8xf32> to vector<1x8x8xf32>
    %146 = vector.shape_cast %145 : vector<1x8x8xf32> to vector<8x8xf32>
    %147 = vector.extract_strided_slice %135 {offsets = [5, 0, 0], sizes = [1, 8, 8], strides = [1, 1, 1]} : vector<8x8x8xf32> to vector<1x8x8xf32>
    %148 = vector.shape_cast %147 : vector<1x8x8xf32> to vector<8x8xf32>
    %149 = vector.extract_strided_slice %135 {offsets = [6, 0, 0], sizes = [1, 8, 8], strides = [1, 1, 1]} : vector<8x8x8xf32> to vector<1x8x8xf32>
    %150 = vector.shape_cast %149 : vector<1x8x8xf32> to vector<8x8xf32>
    %151 = vector.extract_strided_slice %135 {offsets = [7, 0, 0], sizes = [1, 8, 8], strides = [1, 1, 1]} : vector<8x8x8xf32> to vector<1x8x8xf32>
    %152 = vector.shape_cast %151 : vector<1x8x8xf32> to vector<8x8xf32>
    %153 = tpu.concatenate %146, %148, %150, %152 in 1 : vector<8x8xf32>, vector<8x8xf32>, vector<8x8xf32>, vector<8x8xf32> -> vector<8x32xf32>
    %154 = tpu.concatenate %144, %153 in 0 : vector<8x32xf32>, vector<8x32xf32> -> vector<16x32xf32>
    %155 = arith.truncf %154 : vector<16x32xf32> to vector<16x32xbf16>
    %c0_17 = arith.constant 0 : index
    %c0_18 = arith.constant 0 : index
    %156 = vector.load %arg4[%c0_17, %c0_18] : memref<32x32xbf16, #tpu.memory_space<vmem>>, vector<32x32xbf16>
    %cst_19 = arith.constant dense<0.000000e+00> : vector<16x32xf32>
    %157 = tpu.matmul %155, %156, %cst_19 {dimension_numbers = #tpu.dot_dimension_numbers<[1], [0], [0], [1], [0, 0, 1, 1], [], []>} : vector<16x32xbf16>, vector<32x32xbf16>, vector<16x32xf32> -> vector<16x32xf32>
    %158 = arith.addf %157, %11 : vector<16x32xf32>
    %cst_20 = arith.constant dense<0.000000e+00> : vector<16xf32>
    %159 = vector.multi_reduction <add>, %158, %cst_20 [1] : vector<16x32xf32> to vector<16xf32>
    %160 = vector.shape_cast %159 : vector<16xf32> to vector<16x1xf32>
    %cst_21 = arith.constant 3.200000e+01 : f32
    %161 = vector.broadcast %cst_21 : f32 to vector<16x1xf32>
    %162 = arith.divf %160, %161 : vector<16x1xf32>
    %163 = vector.broadcast %162 : vector<16x1xf32> to vector<16x32xf32>
    %164 = arith.subf %158, %163 : vector<16x32xf32>
    %165 = arith.mulf %164, %164 : vector<16x32xf32>
    %cst_22 = arith.constant dense<0.000000e+00> : vector<16xf32>
    %166 = vector.multi_reduction <add>, %165, %cst_22 [1] : vector<16x32xf32> to vector<16xf32>
    %167 = vector.shape_cast %166 : vector<16xf32> to vector<16x1xf32>
    %cst_23 = arith.constant 3.200000e+01 : f32
    %168 = vector.broadcast %cst_23 : f32 to vector<16x1xf32>
    %169 = arith.divf %167, %168 : vector<16x1xf32>
    %170 = vector.broadcast %162 : vector<16x1xf32> to vector<16x32xf32>
    %171 = arith.subf %158, %170 : vector<16x32xf32>
    %cst_24 = arith.constant 9.99999974E-6 : f32
    %172 = vector.broadcast %cst_24 : f32 to vector<16x1xf32>
    %173 = arith.addf %169, %172 : vector<16x1xf32>
    %174 = math.rsqrt %173 : vector<16x1xf32>
    %175 = vector.broadcast %174 : vector<16x1xf32> to vector<16x32xf32>
    %176 = arith.mulf %171, %175 : vector<16x32xf32>
    %c0_25 = arith.constant 0 : index
    %c0_26 = arith.constant 0 : index
    %177 = vector.load %arg5[%c0_25, %c0_26] : memref<1x32xf32, #tpu.memory_space<vmem>>, vector<1x32xf32>
    %178 = vector.broadcast %177 : vector<1x32xf32> to vector<16x32xf32>
    %179 = arith.mulf %176, %178 : vector<16x32xf32>
    %c0_27 = arith.constant 0 : index
    %c0_28 = arith.constant 0 : index
    %180 = vector.load %arg6[%c0_27, %c0_28] : memref<1x32xf32, #tpu.memory_space<vmem>>, vector<1x32xf32>
    %181 = vector.broadcast %180 : vector<1x32xf32> to vector<16x32xf32>
    %182 = arith.addf %179, %181 : vector<16x32xf32>
    %183 = vector.extract_strided_slice %182 {offsets = [0, 0], sizes = [8, 32], strides = [1, 1]} : vector<16x32xf32> to vector<8x32xf32>
    %c0_29 = arith.constant 0 : index
    %c0_30 = arith.constant 0 : index
    %c0_31 = arith.constant 0 : index
    %184 = vector.load %arg7[%c0_29, %c0_30, %c0_31] : memref<2x8x32xf32, #tpu.memory_space<vmem>>, vector<1x8x32xf32>
    %185 = vector.shape_cast %184 : vector<1x8x32xf32> to vector<8x32xf32>
    %186 = vector.shape_cast %183 : vector<8x32xf32> to vector<1x8x32xf32>
    tpu.vector_store %arg7[%c0_29, %c0_30, %c0_31], %186 {strides = array<i32>} : memref<2x8x32xf32, #tpu.memory_space<vmem>>, vector<1x8x32xf32>,
    %187 = vector.extract_strided_slice %182 {offsets = [8, 0], sizes = [8, 32], strides = [1, 1]} : vector<16x32xf32> to vector<8x32xf32>
    %c1_32 = arith.constant 1 : index
    %c0_33 = arith.constant 0 : index
    %c0_34 = arith.constant 0 : index
    %188 = vector.load %arg7[%c1_32, %c0_33, %c0_34] : memref<2x8x32xf32, #tpu.memory_space<vmem>>, vector<1x8x32xf32>
    %189 = vector.shape_cast %188 : vector<1x8x32xf32> to vector<8x32xf32>
    %190 = vector.shape_cast %187 : vector<8x32xf32> to vector<1x8x32xf32>
    tpu.vector_store %arg7[%c1_32, %c0_33, %c0_34], %190 {strides = array<i32>} : memref<2x8x32xf32, #tpu.memory_space<vmem>>, vector<1x8x32xf32>,
    return
  }
  func.func @transform_0(%arg0: i32) -> (i32, i32, i32) {
    %c0_i32 = arith.constant 0 : i32
    %c0_i32_0 = arith.constant 0 : i32
    %c0_i32_1 = arith.constant 0 : i32
    return %arg0, %c0_i32, %c0_i32_0 : i32, i32, i32
  }
  func.func @transform_1(%arg0: i32) -> (i32, i32) {
    %c0_i32 = arith.constant 0 : i32
    %c0_i32_0 = arith.constant 0 : i32
    %c0_i32_1 = arith.constant 0 : i32
    return %c0_i32, %c0_i32_0 : i32, i32
  }
  func.func @transform_2(%arg0: i32) -> (i32, i32) {
    %c0_i32 = arith.constant 0 : i32
    %c0_i32_0 = arith.constant 0 : i32
    %c0_i32_1 = arith.constant 0 : i32
    return %c0_i32, %c0_i32_0 : i32, i32
  }
  func.func @transform_3(%arg0: i32) -> (i32, i32) {
    %c0_i32 = arith.constant 0 : i32
    %c0_i32_0 = arith.constant 0 : i32
    %c0_i32_1 = arith.constant 0 : i32
    return %c0_i32, %c0_i32_0 : i32, i32
  }
  func.func @transform_4(%arg0: i32) -> (i32, i32) {
    %c0_i32 = arith.constant 0 : i32
    %c0_i32_0 = arith.constant 0 : i32
    %c0_i32_1 = arith.constant 0 : i32
    return %c0_i32, %c0_i32_0 : i32, i32
  }
  func.func @transform_5(%arg0: i32) -> (i32, i32) {
    %c0_i32 = arith.constant 0 : i32
    %c0_i32_0 = arith.constant 0 : i32
    %c0_i32_1 = arith.constant 0 : i32
    return %c0_i32, %c0_i32_0 : i32, i32
  }
  func.func @transform_6(%arg0: i32) -> (i32, i32, i32) {
    %c0_i32 = arith.constant 0 : i32
    %c0_i32_0 = arith.constant 0 : i32
    %c0_i32_1 = arith.constant 0 : i32
    return %arg0, %c0_i32, %c0_i32_0 : i32, i32, i32
  }
}

</mosaic_0001>

<bundles_post_ra>
// kernel: tpu_custom_call.1
= control target key start
LH: loop header
LB: loop body
LE: loop exit
PB: predicated region body
PF: predicated region fallthrough
CT: control target
= control target key end

     0   :  { %11 = vsyncpa [#allocation3], 0  ;;  %s2573_s0 = inlined_call_operand.hbm [shape: f32[2,8,32], index: 0, kind: input, shape index: {}]   ;;  %s2574_s1 = inlined_call_operand.hbm [shape: f32[8,32], index: 1, kind: input, shape index: {}]   ;;  %s2575_s2 = inlined_call_operand.hbm [shape: bf16[32,96], index: 2, kind: input, shape index: {}]   ;;  %s2576_s3 = inlined_call_operand.hbm [shape: bf16[32,32], index: 3, kind: input, shape index: {}]   ;;  %s2577_s4 = inlined_call_operand.vmem [shape: f32[1,32], index: 4, kind: input, shape index: {}]   ;;  %s2578_s5 = inlined_call_operand.vmem [shape: f32[1,32], index: 5, kind: input, shape index: {}]   ;;  %s2579_s6 = inlined_call_operand.hbm [shape: f32[2,8,32], index: 6, kind: output, shape index: {}]  }
   0x1   :  { %12 = vsyncpa [#allocation6], 0 }
   0x2   :  { %13 = vsyncpa [#allocation9], 0 }
   0x3   :  { %14 = vsyncpa [#allocation4], 0  ;;  %s1944_s21 = smov [#allocation5]   ;;  %s1945_s23 = smov [#allocation2]  }
   0x4   :  { %s33_s22 = sshll.u32 %s1944_s21, 4  ;;  %s20_s24 = sshll.u32 %s1945_s23, 4  ;;  %s34_s22 = int_to_ptr.vmem [resolvable:$true] %s33_s22  ;;  %s2001_s24 = int_to_ptr.vmem [resolvable:$true] %s20_s24 }
   0x5   :  { %s1826_s27 = scalar_lea.hbm %s2574_s1, 128 }
   0x6   :  { %p1827_p0 = scmp.ne.s32.totalorder %s2574_s1, %s1826_s27  ;;  %p1830_p1 = scmp.lt.u32.totalorder %s1826_s27, %s2574_s1 }
   0x8   :  { %p1832_p2 = pnand %p1830_p1, %p1827_p0 }
   0xa   :  { %1835 = shalt.err (!%p1832_p2)
}
   0xb   :  { %s1836_s8 = scalar_lea.vmem %s34_s22, 128  ;;  %p1841_p4 = scmp.lt.s32.totalorder %s34_s22, %s34_s22 }
   0xc   :  { %p1837_p3 = scmp.ne.s32.totalorder %s34_s22, %s1836_s8  ;;  %p1842_p5 = scmp.lt.s32.totalorder %s1836_s8, %s1836_s8 }
   0xe   :  { %p1843_p6 = por %p1842_p5, %p1841_p4 }
  0x10   :  { %p1844_p7 = pnand %p1843_p6, %p1837_p3 }
  0x12   :  { %1847 = shalt.err (!%p1844_p7)
}
  0x13   :  { %36 = dma.hbm_to_vmem [thread:$0]  %s2574_s1, 128, %s34_s22, [#allocation6]  }
  0x14   :  { %s1848_s13 = scalar_lea.hbm %s2573_s0, 256 }
  0x15   :  { %p1849_p8 = scmp.ne.s32.totalorder %s2573_s0, %s1848_s13  ;;  %p1852_p9 = scmp.lt.u32.totalorder %s1848_s13, %s2573_s0 }
  0x17   :  { %p1854_p10 = pnand %p1852_p9, %p1849_p8 }
  0x19   :  { %1857 = shalt.err (!%p1854_p10)
}
  0x1a   :  { %s1858_s18 = scalar_lea.vmem %s2001_s24, 256  ;;  %p1863_p12 = scmp.lt.s32.totalorder %s2001_s24, %s2001_s24 }
  0x1b   :  { %p1859_p11 = scmp.ne.s32.totalorder %s2001_s24, %s1858_s18  ;;  %p1864_p13 = scmp.lt.s32.totalorder %s1858_s18, %s1858_s18 }
  0x1d   :  { %p1865_p0 = por %p1864_p13, %p1863_p12 }
  0x1f   :  { %p1866_p1 = pnand %p1865_p0, %p1859_p11 }
  0x21   :  { %1869 = shalt.err (!%p1866_p1)
}
  0x22   :  { %s1946_s1 = smov 128   ;;  %s1947_s19 = smov 8  }
  0x23   :  { %26 = dma.hbm_to_vmem [thread:$0]  %s2573_s0, 256, %s2001_s24, [#allocation3], %s1946_s1, %s1946_s1, %s1947_s19  }
  0x24   :  { %s1948_s22 = smov [#allocation7]   ;;  %s1870_s27 = scalar_lea.hbm %s2575_s2, 256 }
  0x25   :  { %s42_s23 = sshll.u32 %s1948_s22, 4  ;;  %p1871_p2 = scmp.ne.s32.totalorder %s2575_s2, %s1870_s27  ;;  %s43_s23 = int_to_ptr.vmem [resolvable:$true] %s42_s23 }
  0x26   :  { %p1874_p3 = scmp.lt.u32.totalorder %s1870_s27, %s2575_s2 }
  0x28   :  { %p1876_p4 = pnand %p1874_p3, %p1871_p2 }
  0x2a   :  { %1879 = shalt.err (!%p1876_p4)
}
  0x2b   :  { %s1880_s8 = scalar_lea.vmem %s43_s23, 256  ;;  %p1885_p6 = scmp.lt.s32.totalorder %s43_s23, %s43_s23 }
  0x2c   :  { %p1881_p5 = scmp.ne.s32.totalorder %s43_s23, %s1880_s8  ;;  %p1886_p7 = scmp.lt.s32.totalorder %s1880_s8, %s1880_s8 }
  0x2e   :  { %p1887_p8 = por %p1886_p7, %p1885_p6 }
  0x30   :  { %p1888_p9 = pnand %p1887_p8, %p1881_p5 }
  0x32   :  { %1891 = shalt.err (!%p1888_p9)
}
  0x33   :  { %s1949_s0 = smov 64   ;;  %s1950_s24 = smov 4  }
  0x34   :  { %48 = dma.hbm_to_vmem [thread:$0]  %s2575_s2, 256, %s43_s23, [#allocation6], %s1949_s0, %s1949_s0, %s1950_s24  }
  0x35   :  { %s1951_s11 = smov [#allocation8]   ;;  %s1892_s15 = scalar_lea.hbm %s2576_s3, 256 }
  0x36   :  { %s54_s12 = sshll.u32 %s1951_s11, 4  ;;  %p1893_p10 = scmp.ne.s32.totalorder %s2576_s3, %s1892_s15  ;;  %s55_s12 = int_to_ptr.vmem [resolvable:$true] %s54_s12 }
  0x37   :  { %p1896_p11 = scmp.lt.u32.totalorder %s1892_s15, %s2576_s3 }
  0x39   :  { %p1898_p12 = pnand %p1896_p11, %p1893_p10 }
  0x3b   :  { %1901 = shalt.err (!%p1898_p12)
}
  0x3c   :  { %s1902_s21 = scalar_lea.vmem %s55_s12, 256  ;;  %p1907_p0 = scmp.lt.s32.totalorder %s55_s12, %s55_s12 }
  0x3d   :  { %p1903_p13 = scmp.ne.s32.totalorder %s55_s12, %s1902_s21  ;;  %p1908_p1 = scmp.lt.s32.totalorder %s1902_s21, %s1902_s21 }
  0x3f   :  { %p1909_p2 = por %p1908_p1, %p1907_p0 }
  0x41   :  { %p1910_p3 = pnand %p1909_p2, %p1903_p13 }
  0x43   :  { %1913 = shalt.err (!%p1910_p3)
}
  0x44   :  { %60 = dma.hbm_to_vmem [thread:$0]  %s2576_s3, 256, %s55_s12, [#allocation9], %s1949_s0, %s1949_s0, %s1950_s24  }
  0x45   :  { %1936 = dma.done.wait [#allocation3], 256  }
  0x46   :  { %1937 = vsyncadd [#allocation3], 4294967040 }
  0x47   :  { %1938 = dma.done.wait [#allocation6], 384  }
  0x48   :  { %1939 = vsyncadd [#allocation6], 4294966912 }
  0x49   :  { %1940 = dma.done.wait [#allocation9], 256  }
  0x4a   :  { %1941 = vsyncadd [#allocation9], 4294967040  ;;  %v1784_v0 = vld [vmem:[#allocation7] sm:$0xff]   ;;  %v1785_v1 = vld [vmem:[#allocation7 + $0x8] sm:$0xff]   ;;  %vm100_vm0 = vcmask 261120   ;;  %s1952_s3 = smov 104  }
  0x4b   :  { %1620 = vmatprep.subr.bf16.mxu0 %v1784_v0  ;;  %v78_v2 = vld [vmem:[#allocation2] sm:$0xff]  ;;  %v80_v3 = vld [vmem:[#allocation2 + $0x8] sm:$0xff]  ;;  %v81_v4 = vld [vmem:[#allocation5] sm:$0xff]  ;;  %s1953_s23 = smov 120   ;;  %v1954_v14 = vmov 0.0   ;;  %s1955_s25 = smov 112  }
  0x4c   :  { %1621 = vmatpush3.bf16.msra.mxu0 %v1784_v0  ;;  %v82_v5 = vpack.c.bf16 %v80_v3, %v78_v2  ;;  %v83_v6 = vpack.c.bf16 %v81_v4, %v81_v4  ;;  %1628 = vmatprep.subr.bf16.mxu1 %v1954_v14  ;;  %vm1956_vm1 = vmmov 0   ;;  %s1957_s26 = smov 96   ;;  %vm204_vm2 = vcmask 64512   ;;  %s1958_s27 = smov 121  }
  0x4d   :  { %1622 = vmatprep.subr.bf16.mxu0 %v1785_v1  ;;  %1630 = vmatprep.mubr.msk.bf16.mxu1 %vm1956_vm1, %v1954_v14  ;;  %s1959_s28 = smov 113   ;;  %vm657_vm3 = vcmask 7168   ;;  %s1960_s29 = smov 122   ;;  %vm756_vm5 = vcmask 15360   ;;  %vm831_vm7 = vcmask 31744   ;;  %vm1009_vm11 = vcmask 1043456  }
  0x4e   :  { %1624 = vmatprep.mubr.msk.bf16.mxu0 %vm100_vm0, %v82_v5  ;;  %s1961_s30 = smov 2   ;;  %s1962_s7 = smov 124   ;;  %vm1409_vm12 = vcmask 130048   ;;  %vm1411_vm13 = vcmask 195584  }
  0x4f   :  { %s1963_s8 = smov 16   ;;  %s1965_s12 = smov [#allocation10]  }
  0x50   :  { %1623 = vmatpush3.bf16.msra.mxu0 %v1785_v1  ;;  %s1542_s13 = sshll.u32 %s1965_s12, 4  ;;  %s1543_s13 = int_to_ptr.vmem [resolvable:$true] %s1542_s13 }
  0x51   :  { %1634 = vmatprep.subr.bf16.mxu0 %v1954_v14  ;;  %s1914_s14 = scalar_lea.vmem %s1543_s13, 256  ;;  %p1919_p5 = scmp.lt.s32.totalorder %s1543_s13, %s1543_s13 }
  0x52   :  { %p1915_p4 = scmp.ne.s32.totalorder %s1543_s13, %s1914_s14  ;;  %p1920_p6 = scmp.lt.s32.totalorder %s1914_s14, %s1914_s14 }
  0x53   :  { %1625 = vmatmul.mubr.msk.bf16.vlgmr.msra.gmra.mrb[0].mxu0 %vm100_vm0, %v83_v6 }
  0x54   :  { %1636 = vmatprep.mubr.msk.bf16.mxu0 %vm1956_vm1, %v1954_v14  ;;  %p1921_p7 = por %p1920_p6, %p1919_p5 }
  0x56   :  { %p1922_p8 = pnand %p1921_p7, %p1915_p4 }
 0x126   :  { %v1626_v7 = vpop.f32.mrb[0].mxu0 }
 0x127   :  { %v141_v8 = vpop.f32.mrb[1].mxu0 }
 0x128   :  { %v1627_v9 = vpop.f32.mrb[2].mxu0  ;;  %v1764_v10 = vpack.i.bf16 %v1626_v7, %v141_v8  ;;  %v193_v11 = vpack.c.bf16 %v1626_v7, %v141_v8  ;;  %v2091_v35 = vpack.c.bf16 %v141_v8, %v141_v8 }
 0x129   :  { %v2067_v12 = vpop.f32.mrb[3].mxu0 }
 0x12a   :  { %1765 = vrot.lane.b32.xlu1 %v1764_v10, %s1952_s3  ;;  %1755 = vrot.lane.b32.xlu0 %v1764_v10, %s1953_s23  ;;  %v197_v13 = vpack.c.bf16 %v1626_v7, %v2067_v12  ;;  %v2126_v50 = vpack.c.bf16 %v2067_v12, %v2067_v12 }
 0x12e   :  { %1760 = vrot.lane.b32.xlu0 %v1764_v10, %s1955_s25  ;;  %166 = vrot.lane.b32.xlu1 %v2067_v12, %s1953_s23 }
 0x132   :  { %169 = vrot.lane.b32.xlu0 %v2067_v12, %s1955_s25  ;;  %172 = vrot.lane.b32.xlu1 %v2067_v12, %s1952_s3 }
 0x136   :  { %202 = vrot.lane.b32.xlu0 %v193_v11, %s1957_s26 }
 0x19c   :  { %v1756_v15 = vpop.permute.xlu0 %1755  ;;  %v1766_v16 = vpop.permute.xlu1 %1765 }
 0x19d   :  { %v1758_v17 = vunpack.i.h.bf16 %v1756_v15  ;;  %v1757_v18 = vunpack.i.l.bf16 %v1756_v15  ;;  %v1768_v20 = vunpack.i.h.bf16 %v1766_v16  ;;  %v1767_v21 = vunpack.i.l.bf16 %v1766_v16 }
 0x19f   :  { %v194_v19 = vpack.c.bf16 %v1758_v17, %v1757_v18  ;;  %v196_v28 = vpack.c.bf16 %v1768_v20, %v1767_v21  ;;  %v2100_v41 = vpack.c.bf16 %v1757_v18, %v1757_v18  ;;  %v2116_v47 = vpack.c.bf16 %v1767_v21, %v1767_v21 }
 0x1a0   :  { %v1761_v22 = vpop.permute.xlu0 %1760  ;;  %v167_v25 = vpop.permute.xlu1 %166 }
 0x1a1   :  { %v1763_v23 = vunpack.i.h.bf16 %v1761_v22  ;;  %v1762_v24 = vunpack.i.l.bf16 %v1761_v22  ;;  %252 = vrot.lane.b32.xlu1 %v194_v19, %s1957_s26  ;;  %v198_v29 = vpack.c.bf16 %v1758_v17, %v167_v25  ;;  %v2134_v53 = vpack.c.bf16 %v167_v25, %v167_v25 }
 0x1a3   :  { %v195_v26 = vpack.c.bf16 %v1763_v23, %v1762_v24  ;;  %v2108_v44 = vpack.c.bf16 %v1762_v24, %v1762_v24 }
 0x1a4   :  { %v170_v27 = vpop.permute.xlu0 %169  ;;  %v173_v31 = vpop.permute.xlu1 %172 }
 0x1a5   :  { %301 = vrot.lane.b32.xlu0 %v195_v26, %s1957_s26  ;;  %350 = vrot.lane.b32.xlu1 %v196_v28, %s1957_s26  ;;  %v199_v33 = vpack.c.bf16 %v1763_v23, %v170_v27  ;;  %v200_v34 = vpack.c.bf16 %v1768_v20, %v173_v31  ;;  %v2142_v55 = vpack.c.bf16 %v170_v27, %v170_v27  ;;  %v594_v20 = vlaneseq }
 0x1a6   :  { %v2149_v56 = vpack.c.bf16 %v173_v31, %v173_v31 }
 0x1a7   :  { %v2206_v25 = vshrl.u32 %v594_v20, 7 }
 0x1a8   :  { %v203_v30 = vpop.permute.xlu0 %202 }
 0x1a9   :  { %399 = vrot.lane.b32.xlu0 %v197_v13, %s1957_s26  ;;  %v209_v32 = vsel %vm204_vm2, %v203_v30, 0  ;;  %448 = vrot.lane.b32.xlu1 %v198_v29, %s1957_s26  ;;  %v2213_v28 = vadd.s32 1, %v2206_v25 }
 0x1aa   :  { %1629 = vmatpush3.bf16.xpose.msra.mxu1 %v209_v32 }
 0x1ab   :  { %1640 = vmatprep.subr.bf16.mxu1 %v1954_v14  ;;  %v599_v30 = vand.u32 1, %v2213_v28 }
 0x1ad   :  { %497 = vrot.lane.b32.xlu0 %v199_v33, %s1957_s26  ;;  %546 = vrot.lane.b32.xlu1 %v200_v34, %s1957_s26  ;;  %vm2224_vm4 = vcmp.ne.s32.totalorder %v599_v30, 0 }
 0x1b1   :  { %1631 = vmatmul.mubr.msk.bf16.vlgmr.msra.gmra.mrb[0].mxu1 %vm204_vm2, %v2091_v35 }
 0x1b2   :  { %1642 = vmatprep.mubr.msk.bf16.mxu1 %vm1956_vm1, %v1954_v14 }
 0x213   :  { %v253_v36 = vpop.permute.xlu1 %252 }
 0x214   :  { %v258_v37 = vsel %vm204_vm2, %v253_v36, 0 }
 0x215   :  { %1635 = vmatpush3.bf16.xpose.msra.mxu0 %v258_v37 }
 0x216   :  { %1646 = vmatprep.subr.bf16.mxu0 %v1954_v14 }
 0x217   :  { %v302_v38 = vpop.permute.xlu0 %301  ;;  %v351_v40 = vpop.permute.xlu1 %350 }
 0x218   :  { %v307_v39 = vsel %vm204_vm2, %v302_v38, 0  ;;  %v356_v42 = vsel %vm204_vm2, %v351_v40, 0 }
 0x219   :  { %1641 = vmatpush3.bf16.xpose.msra.mxu1 %v307_v39 }
 0x21a   :  { %1652 = vmatprep.subr.bf16.mxu1 %v1954_v14 }
 0x21b   :  { %v400_v43 = vpop.permute.xlu0 %399  ;;  %v449_v46 = vpop.permute.xlu1 %448 }
 0x21c   :  { %1637 = vmatmul.mubr.msk.bf16.vlgmr.msra.gmra.mrb[4].mxu0 %vm204_vm2, %v2100_v41  ;;  %v405_v45 = vsel %vm204_vm2, %v400_v43, 0  ;;  %v454_v48 = vsel %vm204_vm2, %v449_v46, 0 }
 0x21d   :  { %1647 = vmatpush3.bf16.xpose.msra.mxu0 %v356_v42  ;;  %1648 = vmatprep.mubr.msk.bf16.mxu0 %vm1956_vm1, %v1954_v14 }
 0x21e   :  { %1658 = vmatprep.subr.bf16.mxu0 %v1954_v14 }
 0x21f   :  { %v498_v49 = vpop.permute.xlu0 %497  ;;  %v547_v52 = vpop.permute.xlu1 %546 }
 0x220   :  { %1643 = vmatmul.mubr.msk.bf16.vlgmr.msra.gmra.mrb[4].mxu1 %vm204_vm2, %v2108_v44  ;;  %v503_v51 = vsel %vm204_vm2, %v498_v49, 0  ;;  %v552_v54 = vsel %vm204_vm2, %v547_v52, 0 }
 0x221   :  { %1653 = vmatpush3.bf16.xpose.msra.mxu1 %v405_v45  ;;  %1654 = vmatprep.mubr.msk.bf16.mxu1 %vm1956_vm1, %v1954_v14 }
 0x222   :  { %1664 = vmatprep.subr.bf16.mxu1 %v1954_v14 }
 0x224   :  { %1649 = vmatmul.mubr.msk.bf16.vlgmr.msra.gmra.mrb[8].mxu0 %vm204_vm2, %v2116_v47 }
 0x225   :  { %1659 = vmatpush3.bf16.xpose.msra.mxu0 %v454_v48  ;;  %1660 = vmatprep.mubr.msk.bf16.mxu0 %vm1956_vm1, %v1954_v14 }
 0x226   :  { %1670 = vmatprep.subr.bf16.mxu0 %v1954_v14 }
 0x228   :  { %1655 = vmatmul.mubr.msk.bf16.vlgmr.msra.gmra.mrb[8].mxu1 %vm204_vm2, %v2126_v50 }
 0x229   :  { %1665 = vmatpush3.bf16.xpose.msra.mxu1 %v503_v51  ;;  %1666 = vmatprep.mubr.msk.bf16.mxu1 %vm1956_vm1, %v1954_v14 }
 0x22a   :  { %1676 = vmatprep.subr.bf16.mxu1 %v1954_v14 }
 0x22c   :  { %1661 = vmatmul.mubr.msk.bf16.vlgmr.msra.gmra.mrb[12].mxu0 %vm204_vm2, %v2134_v53 }
 0x22d   :  { %1671 = vmatpush3.bf16.xpose.msra.mxu0 %v552_v54  ;;  %1672 = vmatprep.mubr.msk.bf16.mxu0 %vm1956_vm1, %v1954_v14 }
 0x22e   :  { %1682 = vmatprep.subr.bf16.mxu0 %v1954_v14 }
 0x230   :  { %1667 = vmatmul.mubr.msk.bf16.vlgmr.msra.gmra.mrb[12].mxu1 %vm204_vm2, %v2142_v55 }
 0x231   :  { %1678 = vmatprep.mubr.msk.bf16.mxu1 %vm1956_vm1, %v1954_v14 }
 0x234   :  { %1673 = vmatmul.mubr.msk.bf16.vlgmr.msra.gmra.mrb[16].mxu0 %vm204_vm2, %v2149_v56 }
 0x235   :  { %1684 = vmatprep.mubr.msk.bf16.mxu0 %vm1956_vm1, %v1954_v14 }
 0x284   :  { %v2155_v57 = vpop.f32.mrb[0].mxu1 }
 0x285   :  { %v1632_v58 = vpop.f32.mrb[1].mxu1  ;;  %633 = vrot.lane.b32.xlu1 %v2155_v57, %s1958_s27  ;;  %609 = vrot.lane.b32.xlu0 %v2155_v57, %s1959_s28 }
 0x286   :  { %v248_v59 = vpop.f32.mrb[2].mxu1 }
 0x287   :  { %v1633_v60 = vpop.f32.mrb[3].mxu1 }
 0x289   :  { %666 = vrot.lane.b32.xlu0 %v2155_v57, %s1953_s23 }
 0x2ef   :  { %v2163_v61 = vpop.f32.mrb[4].mxu0 }
 0x2f0   :  { %635 = vrot.lane.b32.xlu1 %v2163_v61, %s1958_s27  ;;  %v1638_v62 = vpop.f32.mrb[5].mxu0  ;;  %611 = vrot.lane.b32.xlu0 %v2163_v61, %s1959_s28 }
 0x2f1   :  { %v297_v63 = vpop.f32.mrb[6].mxu0 }
 0x2f2   :  { %v1639_v0 = vpop.f32.mrb[7].mxu0 }
 0x2f3   :  { %v2169_v1 = vpop.f32.mrb[4].mxu1 }
 0x2f4   :  { %v1644_v2 = vpop.f32.mrb[5].mxu1  ;;  %668 = vrot.lane.b32.xlu1 %v2163_v61, %s1953_s23  ;;  %613 = vrot.lane.b32.xlu0 %v2169_v1, %s1959_s28 }
 0x2f5   :  { %v346_v3 = vpop.f32.mrb[6].mxu1 }
 0x2f6   :  { %v1645_v4 = vpop.f32.mrb[7].mxu1 }
 0x2f7   :  { %v2175_v5 = vpop.f32.mrb[8].mxu0  ;;  %v610_v29 = vpop.permute.xlu0 %609 }
 0x2f8   :  { %637 = vrot.lane.b32.xlu1 %v2169_v1, %s1958_s27  ;;  %v1650_v6 = vpop.f32.mrb[9].mxu0  ;;  %670 = vrot.lane.b32.xlu0 %v2169_v1, %s1953_s23  ;;  %v634_v31 = vpop.permute.xlu1 %633 }
 0x2f9   :  { %v395_v7 = vpop.f32.mrb[10].mxu0  ;;  %v658_v34 = vsel %vm657_vm3, %v610_v29, %v634_v31 }
 0x2fa   :  { %v1651_v8 = vpop.f32.mrb[11].mxu0 }
 0x2fb   :  { %v2181_v9 = vpop.f32.mrb[8].mxu1  ;;  %v667_v32 = vpop.permute.xlu0 %666 }
 0x2fc   :  { %639 = vrot.lane.b32.xlu1 %v2175_v5, %s1958_s27  ;;  %615 = vrot.lane.b32.xlu0 %v2175_v5, %s1959_s28  ;;  %v1656_v10 = vpop.f32.mrb[9].mxu1  ;;  %v690_v36 = vsel %vm2224_vm4, %v658_v34, %v667_v32 }
 0x2fd   :  { %v444_v11 = vpop.f32.mrb[10].mxu1 }
 0x2fe   :  { %v1657_v12 = vpop.f32.mrb[11].mxu1 }
 0x2ff   :  { %v2187_v13 = vpop.f32.mrb[12].mxu0 }
 0x300   :  { %672 = vrot.lane.b32.xlu1 %v2175_v5, %s1953_s23  ;;  %v1662_v15 = vpop.f32.mrb[13].mxu0  ;;  %617 = vrot.lane.b32.xlu0 %v2181_v9, %s1959_s28 }
 0x301   :  { %v493_v16 = vpop.f32.mrb[14].mxu0 }
 0x302   :  { %v1663_v17 = vpop.f32.mrb[15].mxu0 }
 0x303   :  { %v2193_v18 = vpop.f32.mrb[12].mxu1 }
 0x304   :  { %641 = vrot.lane.b32.xlu1 %v2181_v9, %s1958_s27  ;;  %674 = vrot.lane.b32.xlu0 %v2181_v9, %s1953_s23  ;;  %v1668_v19 = vpop.f32.mrb[13].mxu1 }
 0x305   :  { %v542_v21 = vpop.f32.mrb[14].mxu1 }
 0x306   :  { %v1669_v22 = vpop.f32.mrb[15].mxu1  ;;  %v698_v21 = vand.u32 2, %v2213_v28 }
 0x307   :  { %v2199_v23 = vpop.f32.mrb[16].mxu0 }
 0x308   :  { %v1674_v24 = vpop.f32.mrb[17].mxu0  ;;  %643 = vrot.lane.b32.xlu1 %v2187_v13, %s1958_s27  ;;  %619 = vrot.lane.b32.xlu0 %v2187_v13, %s1959_s28  ;;  %vm2271_vm6 = vcmp.ne.s32.totalorder %v698_v21, 0 }
 0x309   :  { %v591_v26 = vpop.f32.mrb[18].mxu0 }
 0x30a   :  { %v1675_v27 = vpop.f32.mrb[19].mxu0 }
 0x30c   :  { %676 = vrot.lane.b32.xlu1 %v2187_v13, %s1953_s23  ;;  %621 = vrot.lane.b32.xlu0 %v2193_v18, %s1959_s28 }
 0x310   :  { %645 = vrot.lane.b32.xlu1 %v2193_v18, %s1958_s27  ;;  %623 = vrot.lane.b32.xlu0 %v2199_v23, %s1959_s28 }
 0x314   :  { %647 = vrot.lane.b32.xlu1 %v2199_v23, %s1958_s27  ;;  %678 = vrot.lane.b32.xlu0 %v2193_v18, %s1953_s23 }
 0x318   :  { %680 = vrot.lane.b32.xlu1 %v2199_v23, %s1953_s23  ;;  %708 = vrot.lane.b32.xlu0 %v690_v36, %s1960_s29 }
 0x31c   :  { %732 = vrot.lane.b32.xlu1 %v690_v36, %s1961_s30 }
 0x362   :  { %v636_v37 = vpop.permute.xlu1 %635  ;;  %v612_v38 = vpop.permute.xlu0 %611 }
 0x363   :  { %v659_v39 = vsel %vm657_vm3, %v612_v38, %v636_v37 }
 0x366   :  { %v669_v40 = vpop.permute.xlu1 %668  ;;  %v614_v42 = vpop.permute.xlu0 %613 }
 0x367   :  { %v691_v43 = vsel %vm2224_vm4, %v659_v39, %v669_v40 }
 0x368   :  { %734 = vrot.lane.b32.xlu1 %v691_v43, %s1961_s30  ;;  %710 = vrot.lane.b32.xlu0 %v691_v43, %s1960_s29 }
 0x36a   :  { %v638_v45 = vpop.permute.xlu1 %637  ;;  %v671_v46 = vpop.permute.xlu0 %670 }
 0x36b   :  { %v660_v48 = vsel %vm657_vm3, %v614_v42, %v638_v45 }
 0x36c   :  { %v692_v49 = vsel %vm2224_vm4, %v660_v48, %v671_v46 }
 0x36d   :  { %736 = vrot.lane.b32.xlu1 %v692_v49, %s1961_s30  ;;  %712 = vrot.lane.b32.xlu0 %v692_v49, %s1960_s29 }
 0x36e   :  { %v640_v51 = vpop.permute.xlu1 %639  ;;  %v616_v52 = vpop.permute.xlu0 %615 }
 0x36f   :  { %v661_v54 = vsel %vm657_vm3, %v616_v52, %v640_v51 }
 0x372   :  { %v673_v58 = vpop.permute.xlu1 %672  ;;  %v618_v59 = vpop.permute.xlu0 %617 }
 0x373   :  { %v693_v60 = vsel %vm2224_vm4, %v661_v54, %v673_v58 }
 0x374   :  { %738 = vrot.lane.b32.xlu1 %v693_v60, %s1961_s30  ;;  %714 = vrot.lane.b32.xlu0 %v693_v60, %s1960_s29 }
 0x376   :  { %v642_v62 = vpop.permute.xlu1 %641  ;;  %v675_v63 = vpop.permute.xlu0 %674 }
 0x377   :  { %v662_v0 = vsel %vm657_vm3, %v618_v59, %v642_v62 }
 0x378   :  { %v694_v2 = vsel %vm2224_vm4, %v662_v0, %v675_v63 }
 0x379   :  { %740 = vrot.lane.b32.xlu1 %v694_v2, %s1961_s30  ;;  %716 = vrot.lane.b32.xlu0 %v694_v2, %s1960_s29 }
 0x37a   :  { %v644_v3 = vpop.permute.xlu1 %643  ;;  %v620_v4 = vpop.permute.xlu0 %619 }
 0x37b   :  { %v663_v6 = vsel %vm657_vm3, %v620_v4, %v644_v3 }
 0x37e   :  { %v677_v7 = vpop.permute.xlu1 %676  ;;  %v622_v8 = vpop.permute.xlu0 %621 }
 0x37f   :  { %v695_v10 = vsel %vm2224_vm4, %v663_v6, %v677_v7  ;;  %v773_v7 = vand.u32 4, %v2213_v28 }
 0x380   :  { %742 = vrot.lane.b32.xlu1 %v695_v10, %s1961_s30  ;;  %718 = vrot.lane.b32.xlu0 %v695_v10, %s1960_s29 }
 0x381   :  { %vm2331_vm8 = vcmp.ne.s32.totalorder %v773_v7, 0 }
 0x382   :  { %v646_v11 = vpop.permute.xlu1 %645  ;;  %v624_v12 = vpop.permute.xlu0 %623 }
 0x383   :  { %v664_v15 = vsel %vm657_vm3, %v622_v8, %v646_v11  ;;  %v597_v11 = vand.u32 127, %v594_v20 }
 0x385   :  { %vm2341_vm9 = vcmp.eq.s32.totalorder %v597_v11, %v2213_v28  ;;  %vm2346_vm10 = vcmp.le.s32.totalorder %v597_v11, %v2206_v25 }
 0x386   :  { %v648_v16 = vpop.permute.xlu1 %647  ;;  %v679_v17 = vpop.permute.xlu0 %678 }
 0x387   :  { %v696_v19 = vsel %vm2224_vm4, %v664_v15, %v679_v17  ;;  %v665_v22 = vsel %vm657_vm3, %v624_v12, %v648_v16 }
 0x388   :  { %744 = vrot.lane.b32.xlu1 %v696_v19, %s1961_s30  ;;  %720 = vrot.lane.b32.xlu0 %v696_v19, %s1960_s29 }
 0x38a   :  { %v681_v24 = vpop.permute.xlu1 %680  ;;  %v709_v29 = vpop.permute.xlu0 %708 }
 0x38b   :  { %v697_v26 = vsel %vm2224_vm4, %v665_v22, %v681_v24 }
 0x38c   :  { %746 = vrot.lane.b32.xlu1 %v697_v26, %s1961_s30  ;;  %722 = vrot.lane.b32.xlu0 %v697_v26, %s1960_s29 }
 0x38e   :  { %v733_v30 = vpop.permute.xlu1 %732 }
 0x38f   :  { %v757_v31 = vsel %vm756_vm5, %v709_v29, %v733_v30 }
 0x390   :  { %v765_v32 = vsel %vm2271_vm6, %v757_v31, %v690_v36 }
 0x391   :  { %807 = vrot.lane.b32.xlu1 %v765_v32, %s1950_s24  ;;  %783 = vrot.lane.b32.xlu0 %v765_v32, %s1962_s7 }
 0x3da   :  { %v735_v33 = vpop.permute.xlu1 %734  ;;  %v711_v34 = vpop.permute.xlu0 %710 }
 0x3db   :  { %v758_v37 = vsel %vm756_vm5, %v711_v34, %v735_v33 }
 0x3dc   :  { %v766_v38 = vsel %vm2271_vm6, %v758_v37, %v691_v43 }
 0x3dd   :  { %809 = vrot.lane.b32.xlu1 %v766_v38, %s1950_s24  ;;  %785 = vrot.lane.b32.xlu0 %v766_v38, %s1962_s7 }
 0x3df   :  { %v737_v39 = vpop.permute.xlu1 %736  ;;  %v713_v40 = vpop.permute.xlu0 %712 }
 0x3e0   :  { %v759_v36 = vsel %vm756_vm5, %v713_v40, %v737_v39 }
 0x3e1   :  { %v767_v42 = vsel %vm2271_vm6, %v759_v36, %v692_v49 }
 0x3e2   :  { %811 = vrot.lane.b32.xlu1 %v767_v42, %s1950_s24  ;;  %787 = vrot.lane.b32.xlu0 %v767_v42, %s1962_s7 }
 0x3e6   :  { %v739_v45 = vpop.permute.xlu1 %738  ;;  %v715_v46 = vpop.permute.xlu0 %714 }
 0x3e7   :  { %v760_v48 = vsel %vm756_vm5, %v715_v46, %v739_v45 }
 0x3e8   :  { %v2293_v43 = vsel %vm2271_vm6, %v760_v48, %v693_v60 }
 0x3e9   :  { %813 = vrot.lane.b32.xlu1 %v2293_v43, %s1950_s24  ;;  %789 = vrot.lane.b32.xlu0 %v2293_v43, %s1962_s7 }
 0x3eb   :  { %v741_v51 = vpop.permute.xlu1 %740  ;;  %v717_v49 = vpop.permute.xlu0 %716 }
 0x3ec   :  { %v761_v52 = vsel %vm756_vm5, %v717_v49, %v741_v51 }
 0x3ed   :  { %v2302_v54 = vsel %vm2271_vm6, %v761_v52, %v694_v2 }
 0x3ee   :  { %815 = vrot.lane.b32.xlu1 %v2302_v54, %s1950_s24  ;;  %791 = vrot.lane.b32.xlu0 %v2302_v54, %s1962_s7 }
 0x3f2   :  { %v743_v58 = vpop.permute.xlu1 %742  ;;  %v719_v59 = vpop.permute.xlu0 %718 }
 0x3f3   :  { %v762_v60 = vsel %vm756_vm5, %v719_v59, %v743_v58 }
 0x3f4   :  { %v2311_v62 = vsel %vm2271_vm6, %v762_v60, %v695_v10 }
 0x3f5   :  { %817 = vrot.lane.b32.xlu1 %v2311_v62, %s1950_s24 }
 0x3fa   :  { %v745_v63 = vpop.permute.xlu1 %744  ;;  %v721_v0 = vpop.permute.xlu0 %720 }
 0x3fb   :  { %v763_v2 = vsel %vm756_vm5, %v721_v0, %v745_v63 }
 0x3fc   :  { %v2318_v3 = vsel %vm2271_vm6, %v763_v2, %v696_v19 }
 0x3fd   :  { %819 = vrot.lane.b32.xlu1 %v2318_v3, %s1950_s24 }
 0x3fe   :  { %v747_v4 = vpop.permute.xlu1 %746  ;;  %v723_v6 = vpop.permute.xlu0 %722 }
 0x3ff   :  { %v764_v8 = vsel %vm756_vm5, %v723_v6, %v747_v4 }
 0x400   :  { %v2326_v10 = vsel %vm2271_vm6, %v764_v8, %v697_v26 }
 0x401   :  { %821 = vrot.lane.b32.xlu1 %v2326_v10, %s1950_s24 }
 0x403   :  { %v808_v15 = vpop.permute.xlu1 %807  ;;  %v784_v16 = vpop.permute.xlu0 %783 }
 0x404   :  { %v832_v17 = vsel %vm831_vm7, %v784_v16, %v808_v15 }
 0x405   :  { %v840_v19 = vsel %vm2331_vm8, %v832_v17, %v765_v32  ;;  %1004 = vrot.lane.b32.xlu1 %v2091_v35, %s1949_s0 }
 0x406   :  { %v856_v20 = vrot.slane %v840_v19, 1 }
 0x408   :  { %v883_v24 = vsel %vm2341_vm9, 0.0, %v856_v20 }
 0x409   :  { %v891_v26 = vsel %vm2346_vm10, %v840_v19, %v883_v24 }
 0x40a   :  { %v2355_v27 = vadd.f32 %v891_v26, %v2155_v57 }
 0x40c   :  { %v907_v35 = vsel %vm204_vm2, %v2355_v27, -inf }
 0x40d   :  { %908 = vmax.xlane.f32.xlu0 %v907_v35 }
 0x423   :  { %793 = vrot.lane.b32.xlu0 %v2311_v62, %s1962_s7 }
 0x427   :  { %795 = vrot.lane.b32.xlu0 %v2318_v3, %s1962_s7 }
 0x42b   :  { %797 = vrot.lane.b32.xlu0 %v2326_v10, %s1962_s7 }
 0x44f   :  { %v810_v25 = vpop.permute.xlu1 %809  ;;  %v786_v28 = vpop.permute.xlu0 %785 }
 0x450   :  { %v833_v29 = vsel %vm831_vm7, %v786_v28, %v810_v25 }
 0x451   :  { %v841_v57 = vsel %vm2331_vm8, %v833_v29, %v766_v38 }
 0x452   :  { %v857_v30 = vrot.slane %v841_v57, 1 }
 0x454   :  { %v812_v31 = vpop.permute.xlu1 %811  ;;  %v788_v32 = vpop.permute.xlu0 %787  ;;  %v884_v33 = vsel %vm2341_vm9, 0.0, %v857_v30 }
 0x455   :  { %v834_v34 = vsel %vm831_vm7, %v788_v32, %v812_v31  ;;  %v892_v37 = vsel %vm2346_vm10, %v841_v57, %v884_v33 }
 0x456   :  { %v842_v39 = vsel %vm2331_vm8, %v834_v34, %v767_v42  ;;  %v2376_v40 = vadd.f32 %v892_v37, %v2163_v61 }
 0x457   :  { %v858_v36 = vrot.slane %v842_v39, 1 }
 0x458   :  { %v910_v38 = vsel %vm204_vm2, %v2376_v40, -inf }
 0x459   :  { %911 = vmax.xlane.f32.xlu1 %v910_v38  ;;  %v885_v45 = vsel %vm2341_vm9, 0.0, %v858_v36 }
 0x45a   :  { %v893_v46 = vsel %vm2346_vm10, %v842_v39, %v885_v45 }
 0x45b   :  { %v814_v48 = vpop.permute.xlu1 %813  ;;  %v790_v51 = vpop.permute.xlu0 %789  ;;  %v2385_v49 = vadd.f32 %v893_v46, %v2169_v1 }
 0x45c   :  { %v835_v42 = vsel %vm831_vm7, %v790_v51, %v814_v48 }
 0x45d   :  { %v843_v61 = vsel %vm2331_vm8, %v835_v42, %v2293_v43  ;;  %v913_v52 = vsel %vm204_vm2, %v2385_v49, -inf }
 0x45e   :  { %v859_v58 = vrot.slane %v843_v61, 1  ;;  %914 = vmax.xlane.f32.xlu0 %v913_v52 }
 0x460   :  { %v816_v59 = vpop.permute.xlu1 %815  ;;  %v792_v60 = vpop.permute.xlu0 %791  ;;  %v886_v63 = vsel %vm2341_vm9, 0.0, %v859_v58 }
 0x461   :  { %v836_v0 = vsel %vm831_vm7, %v792_v60, %v816_v59  ;;  %v894_v1 = vsel %vm2346_vm10, %v843_v61, %v886_v63 }
 0x462   :  { %v844_v2 = vsel %vm2331_vm8, %v836_v0, %v2302_v54  ;;  %v2402_v43 = vadd.f32 %v894_v1, %v2175_v5 }
 0x463   :  { %v860_v4 = vrot.slane %v844_v2, 1 }
 0x464   :  { %v916_v6 = vsel %vm204_vm2, %v2402_v43, -inf }
 0x465   :  { %917 = vmax.xlane.f32.xlu0 %v916_v6  ;;  %v887_v7 = vsel %vm2341_vm9, 0.0, %v860_v4 }
 0x466   :  { %v895_v8 = vsel %vm2346_vm10, %v844_v2, %v887_v7 }
 0x467   :  { %v2411_v11 = vadd.f32 %v895_v8, %v2181_v9  ;;  %v818_v5 = vpop.permute.xlu1 %817 }
 0x469   :  { %v919_v54 = vsel %vm204_vm2, %v2411_v11, -inf }
 0x46a   :  { %920 = vmax.xlane.f32.xlu1 %v919_v54 }
 0x46f   :  { %v820_v15 = vpop.permute.xlu1 %819 }
 0x473   :  { %v822_v16 = vpop.permute.xlu1 %821 }
 0x477   :  { %v1005_v17 = vpop.permute.xlu1 %1004 }
 0x478   :  { %v1011_v19 = vsel %vm1009_vm11, %v1005_v17, 0 }
 0x479   :  { %1677 = vmatpush3.bf16.msra.mxu1 %v1011_v19 }
 0x47a   :  { %1688 = vmatprep.subr.bf16.mxu1 %v1954_v14 }
 0x49a   :  { %v909_v20 = vpop.xlane.xlu0 %908 }
 0x49e   :  { %v794_v24 = vpop.permute.xlu0 %793 }
 0x49f   :  { %v837_v26 = vsel %vm831_vm7, %v794_v24, %v818_v5 }
 0x4a0   :  { %v845_v9 = vsel %vm2331_vm8, %v837_v26, %v2311_v62 }
 0x4a1   :  { %v861_v35 = vrot.slane %v845_v9, 1 }
 0x4a2   :  { %v796_v25 = vpop.permute.xlu0 %795 }
 0x4a3   :  { %v838_v28 = vsel %vm831_vm7, %v796_v25, %v820_v15  ;;  %v888_v29 = vsel %vm2341_vm9, 0.0, %v861_v35 }
 0x4a4   :  { %v846_v57 = vsel %vm2331_vm8, %v838_v28, %v2318_v3  ;;  %v896_v30 = vsel %vm2346_vm10, %v845_v9, %v888_v29 }
 0x4a5   :  { %v862_v31 = vrot.slane %v846_v57, 1  ;;  %v904_v32 = vadd.f32 %v896_v30, %v2187_v13 }
 0x4a6   :  { %v798_v33 = vpop.permute.xlu0 %797 }
 0x4a7   :  { %v839_v62 = vsel %vm831_vm7, %v798_v33, %v822_v16  ;;  %v922_v34 = vsel %vm204_vm2, %v904_v32, -inf  ;;  %v889_v37 = vsel %vm2341_vm9, 0.0, %v862_v31 }
 0x4a8   :  { %v847_v39 = vsel %vm2331_vm8, %v839_v62, %v2326_v10  ;;  %923 = vmax.xlane.f32.xlu0 %v922_v34  ;;  %v897_v3 = vsel %vm2346_vm10, %v846_v57, %v889_v37 }
 0x4a9   :  { %v863_v36 = vrot.slane %v847_v39, 1  ;;  %v905_v38 = vadd.f32 %v897_v3, %v2193_v18  ;;  %v931_v18 = vsub.f32 %v2355_v27, %v909_v20 }
 0x4ab   :  { %v925_v13 = vsel %vm204_vm2, %v905_v38, -inf  ;;  %v890_v45 = vsel %vm2341_vm9, 0.0, %v863_v36  ;;  %v939_v12 = vmul.f32 1.442695, %v931_v18 }
 0x4ac   :  { %926 = vmax.xlane.f32.xlu1 %v925_v13  ;;  %v898_v46 = vsel %vm2346_vm10, %v847_v39, %v890_v45 }
 0x4ad   :  { %v906_v48 = vadd.f32 %v898_v46, %v2199_v23  ;;  %1788 = vpow2.f32 %v939_v12 }
 0x4af   :  { %v928_v10 = vsel %vm204_vm2, %v906_v48, -inf }
 0x4b0   :  { %929 = vmax.xlane.f32.xlu0 %v928_v10 }
 0x4b7   :  { %v2454_v21 = vpop.eup %1788 }
 0x4b8   :  { %v955_v23 = vsel %vm204_vm2, %v2454_v21, 0.0 }
 0x4bd   :  { %1103 = vrot.lane.b32.xlu1 %v2108_v44, %s1949_s0 }
 0x4c1   :  { %1152 = vrot.lane.b32.xlu1 %v2116_v47, %s1949_s0 }
 0x4c6   :  { %1054 = vrot.lane.b32.xlu0 %v2100_v41, %s1949_s0 }
 0x4e5   :  { %956 = vadd.xlane.f32.xlu1 %v955_v23 }
 0x4e6   :  { %v912_v22 = vpop.xlane.xlu1 %911 }
 0x4e7   :  { %v932_v51 = vsub.f32 %v2376_v40, %v912_v22 }
 0x4e9   :  { %v941_v44 = vmul.f32 1.442695, %v932_v51 }
 0x4eb   :  { %1790 = vpow2.f32 %v941_v44  ;;  %v915_v42 = vpop.xlane.xlu0 %914 }
 0x4ec   :  { %v933_v47 = vsub.f32 %v2385_v49, %v915_v42 }
 0x4ee   :  { %v943_v61 = vmul.f32 1.442695, %v933_v47 }
 0x4f0   :  { %1792 = vpow2.f32 %v943_v61 }
 0x4f2   :  { %v918_v41 = vpop.xlane.xlu0 %917 }
 0x4f3   :  { %v934_v27 = vsub.f32 %v2402_v43, %v918_v41 }
 0x4f5   :  { %v2461_v52 = vpop.eup %1790  ;;  %v945_v58 = vmul.f32 1.442695, %v934_v27 }
 0x4f6   :  { %v958_v59 = vsel %vm204_vm2, %v2461_v52, 0.0 }
 0x4f7   :  { %1794 = vpow2.f32 %v945_v58  ;;  %959 = vadd.xlane.f32.xlu0 %v958_v59  ;;  %v921_v0 = vpop.xlane.xlu1 %920 }
 0x4f8   :  { %v935_v1 = vsub.f32 %v2411_v11, %v921_v0 }
 0x4fa   :  { %v2465_v60 = vpop.eup %1792  ;;  %v947_v2 = vmul.f32 1.442695, %v935_v1 }
 0x4fb   :  { %v961_v40 = vsel %vm204_vm2, %v2465_v60, 0.0 }
 0x4fc   :  { %962 = vadd.xlane.f32.xlu1 %v961_v40  ;;  %1796 = vpow2.f32 %v947_v2 }
 0x501   :  { %v2469_v49 = vpop.eup %1794 }
 0x502   :  { %v964_v63 = vsel %vm204_vm2, %v2469_v49, 0.0 }
 0x503   :  { %965 = vadd.xlane.f32.xlu0 %v964_v63 }
 0x506   :  { %v2478_v43 = vpop.eup %1796 }
 0x507   :  { %v967_v4 = vsel %vm204_vm2, %v2478_v43, 0.0 }
 0x50d   :  { %1250 = vrot.lane.b32.xlu1 %v2134_v53, %s1949_s0 }
 0x519   :  { %1201 = vrot.lane.b32.xlu0 %v2126_v50, %s1949_s0 }
 0x531   :  { %968 = vadd.xlane.f32.xlu1 %v967_v4 }
 0x535   :  { %v924_v6 = vpop.xlane.xlu0 %923 }
 0x536   :  { %v936_v7 = vsub.f32 %v904_v32, %v924_v6 }
 0x538   :  { %v949_v8 = vmul.f32 1.442695, %v936_v7 }
 0x539   :  { %v927_v54 = vpop.xlane.xlu1 %926 }
 0x53a   :  { %1798 = vpow2.f32 %v949_v8  ;;  %v937_v53 = vsub.f32 %v905_v38, %v927_v54 }
 0x53c   :  { %v951_v5 = vmul.f32 1.442695, %v937_v53 }
 0x53d   :  { %v930_v15 = vpop.xlane.xlu0 %929  ;;  %v1104_v25 = vpop.permute.xlu1 %1103 }
 0x53e   :  { %1800 = vpow2.f32 %v951_v5  ;;  %v938_v50 = vsub.f32 %v906_v48, %v930_v15  ;;  %v1109_v32 = vsel %vm1009_vm11, %v1104_v25, 0 }
 0x540   :  { %v953_v16 = vmul.f32 1.442695, %v938_v50 }
 0x541   :  { %v1055_v11 = vpop.permute.xlu0 %1054  ;;  %v1153_v28 = vpop.permute.xlu1 %1152 }
 0x542   :  { %1802 = vpow2.f32 %v953_v16  ;;  %v1060_v17 = vsel %vm1009_vm11, %v1055_v11, 0  ;;  %v1158_v3 = vsel %vm1009_vm11, %v1153_v28, 0  ;;  %v1786_v28 = vld [vmem:[#allocation8] sm:$0xff]  }
 0x543   :  { %1683 = vmatpush3.bf16.msra.mxu0 %v1060_v17 }
 0x544   :  { %v2483_v19 = vpop.eup %1798  ;;  %1694 = vmatprep.subr.bf16.mxu0 %v1954_v14 }
 0x545   :  { %v970_v20 = vsel %vm204_vm2, %v2483_v19, 0.0 }
 0x546   :  { %971 = vadd.xlane.f32.xlu0 %v970_v20 }
 0x548   :  { %v2488_v24 = vpop.eup %1800 }
 0x549   :  { %v973_v26 = vsel %vm204_vm2, %v2488_v24, 0.0 }
 0x54a   :  { %974 = vadd.xlane.f32.xlu1 %v973_v26 }
 0x54c   :  { %v2492_v9 = vpop.eup %1802 }
 0x54d   :  { %v976_v35 = vsel %vm204_vm2, %v2492_v9, 0.0 }
 0x54e   :  { %977 = vadd.xlane.f32.xlu0 %v976_v35 }
 0x55b   :  { %1348 = vrot.lane.b32.xlu1 %v2149_v56, %s1949_s0 }
 0x564   :  { %1299 = vrot.lane.b32.xlu0 %v2142_v55, %s1949_s0  ;;  %s1964_s0 = smov 24  }
 0x572   :  { %v957_v29 = vpop.xlane.xlu1 %956 }
 0x573   :  { %1804 = vrcp.f32 %v957_v29  ;;  %v1787_v29 = vld [vmem:[#allocation8 + $0x8] sm:$0xff]  }
 0x57d   :  { %v1805_v57 = vpop.eup %1804 }
 0x57e   :  { %v987_v30 = vmul.f32 %v1805_v57, %v2454_v21 }
 0x580   :  { %v995_v31 = vpack.c.bf16 %v987_v30, %v987_v30 }
 0x582   :  { %1679 = vmatmul.mubr.msk.bf16.vlgmr.msra.gmra.mrb[16].mxu1 %vm204_vm2, %v995_v31 }
 0x583   :  { %1689 = vmatpush3.bf16.msra.mxu1 %v1109_v32  ;;  %1690 = vmatprep.mubr.msk.bf16.mxu1 %vm1956_vm1, %v1954_v14 }
 0x584   :  { %v960_v56 = vpop.xlane.xlu0 %959  ;;  %1700 = vmatprep.subr.bf16.mxu1 %v1954_v14 }
 0x585   :  { %1806 = vrcp.f32 %v960_v56 }
 0x589   :  { %v963_v55 = vpop.xlane.xlu1 %962 }
 0x58a   :  { %1808 = vrcp.f32 %v963_v55 }
 0x58d   :  { %v1251_v10 = vpop.permute.xlu1 %1250 }
 0x58e   :  { %v1256_v12 = vsel %vm1009_vm11, %v1251_v10, 0 }
 0x58f   :  { %v1807_v33 = vpop.eup %1806 }
 0x590   :  { %v988_v62 = vmul.f32 %v1807_v33, %v2461_v52  ;;  %v966_v34 = vpop.xlane.xlu0 %965 }
 0x591   :  { %1810 = vrcp.f32 %v966_v34 }
 0x592   :  { %v996_v37 = vpack.c.bf16 %v988_v62, %v988_v62 }
 0x594   :  { %v1809_v39 = vpop.eup %1808  ;;  %1685 = vmatmul.mubr.msk.bf16.vlgmr.msra.gmra.mrb[20].mxu0 %vm204_vm2, %v996_v37  ;;  %v1202_v38 = vpop.permute.xlu0 %1201 }
 0x595   :  { %v989_v36 = vmul.f32 %v1809_v39, %v2465_v60  ;;  %1695 = vmatpush3.bf16.msra.mxu0 %v1158_v3  ;;  %1696 = vmatprep.mubr.msk.bf16.mxu0 %vm1956_vm1, %v1954_v14  ;;  %v1207_v45 = vsel %vm1009_vm11, %v1202_v38, 0 }
 0x596   :  { %1706 = vmatprep.subr.bf16.mxu0 %v1954_v14 }
 0x597   :  { %v997_v13 = vpack.c.bf16 %v989_v36, %v989_v36 }
 0x599   :  { %1691 = vmatmul.mubr.msk.bf16.vlgmr.msra.gmra.mrb[20].mxu1 %vm204_vm2, %v997_v13 }
 0x59a   :  { %1701 = vmatpush3.bf16.msra.mxu1 %v1207_v45  ;;  %1702 = vmatprep.mubr.msk.bf16.mxu1 %vm1956_vm1, %v1954_v14 }
 0x59b   :  { %v1811_v46 = vpop.eup %1810  ;;  %1712 = vmatprep.subr.bf16.mxu1 %v1954_v14 }
 0x59c   :  { %v990_v48 = vmul.f32 %v1811_v46, %v2469_v49 }
 0x59e   :  { %v998_v18 = vpack.c.bf16 %v990_v48, %v990_v48 }
 0x5a0   :  { %1697 = vmatmul.mubr.msk.bf16.vlgmr.msra.gmra.mrb[24].mxu0 %vm204_vm2, %v998_v18 }
 0x5a1   :  { %1707 = vmatpush3.bf16.msra.mxu0 %v1256_v12  ;;  %1708 = vmatprep.mubr.msk.bf16.mxu0 %vm1956_vm1, %v1954_v14 }
 0x5a2   :  { %1718 = vmatprep.subr.bf16.mxu0 %v1954_v14 }
 0x5be   :  { %v969_v21 = vpop.xlane.xlu1 %968 }
 0x5bf   :  { %1812 = vrcp.f32 %v969_v21 }
 0x5c9   :  { %v1813_v23 = vpop.eup %1812 }
 0x5ca   :  { %v991_v22 = vmul.f32 %v1813_v23, %v2478_v43 }
 0x5cc   :  { %v999_v51 = vpack.c.bf16 %v991_v22, %v991_v22 }
 0x5ce   :  { %1703 = vmatmul.mubr.msk.bf16.vlgmr.msra.gmra.mrb[24].mxu1 %vm204_vm2, %v999_v51 }
 0x5cf   :  { %1714 = vmatprep.mubr.msk.bf16.mxu1 %vm1956_vm1, %v1954_v14 }
 0x5d3   :  { %v972_v44 = vpop.xlane.xlu0 %971 }
 0x5d4   :  { %1814 = vrcp.f32 %v972_v44 }
 0x5d7   :  { %v975_v42 = vpop.xlane.xlu1 %974 }
 0x5d8   :  { %1816 = vrcp.f32 %v975_v42 }
 0x5db   :  { %v978_v47 = vpop.xlane.xlu0 %977  ;;  %v1349_v52 = vpop.permute.xlu1 %1348 }
 0x5dc   :  { %1818 = vrcp.f32 %v978_v47  ;;  %v1354_v49 = vsel %vm1009_vm11, %v1349_v52, 0  ;;  %v1824_v52 = vld [vmem:[#allocation2] sm:$0xff] }
 0x5de   :  { %v1815_v61 = vpop.eup %1814 }
 0x5df   :  { %v992_v41 = vmul.f32 %v1815_v61, %v2483_v19  ;;  %v1300_v27 = vpop.permute.xlu0 %1299 }
 0x5e0   :  { %v1305_v58 = vsel %vm1009_vm11, %v1300_v27, 0 }
 0x5e1   :  { %1713 = vmatpush3.bf16.msra.mxu1 %v1305_v58  ;;  %v1000_v59 = vpack.c.bf16 %v992_v41, %v992_v41 }
 0x5e2   :  { %v1817_v60 = vpop.eup %1816  ;;  %1724 = vmatprep.subr.bf16.mxu1 %v1954_v14 }
 0x5e3   :  { %v993_v40 = vmul.f32 %v1817_v60, %v2488_v24  ;;  %1709 = vmatmul.mubr.msk.bf16.vlgmr.msra.gmra.mrb[28].mxu0 %vm204_vm2, %v1000_v59 }
 0x5e4   :  { %1719 = vmatpush3.bf16.msra.mxu0 %v1354_v49  ;;  %1720 = vmatprep.mubr.msk.bf16.mxu0 %vm1956_vm1, %v1954_v14 }
 0x5e5   :  { %v1001_v63 = vpack.c.bf16 %v993_v40, %v993_v40  ;;  %v1825_v40 = vld [vmem:[#allocation2 + $0x8] sm:$0xff] }
 0x5e6   :  { %v1819_v0 = vpop.eup %1818 }
 0x5e7   :  { %v994_v1 = vmul.f32 %v1819_v0, %v2492_v9  ;;  %1715 = vmatmul.mubr.msk.bf16.vlgmr.msra.gmra.mrb[28].mxu1 %vm204_vm2, %v1001_v63 }
 0x5e8   :  { %1728 = vmatprep.mubr.msk.bf16.mxu1 %vm1956_vm1, %v1954_v14  ;;  %1725 = vmatpush3.bf16.msra.mxu1 %v1786_v28 }
 0x5e9   :  { %v1002_v2 = vpack.c.bf16 %v994_v1, %v994_v1  ;;  %1726 = vmatprep.subr.bf16.mxu1 %v1954_v14 }
 0x5eb   :  { %1721 = vmatmul.mubr.msk.bf16.vlgmr.msra.gmra.mrb[32].mxu0 %vm204_vm2, %v1002_v2 }
 0x5ec   :  { %1727 = vmatpush3.bf16.msra.mxu1 %v1787_v29 }
 0x655   :  { %v1047_v43 = vpop.f32.mrb[16].mxu1 }
 0x656   :  { %v1680_v4 = vpop.f32.mrb[17].mxu1 }
 0x657   :  { %v1050_v6 = vpop.f32.mrb[18].mxu1 }
 0x658   :  { %v1681_v7 = vpop.f32.mrb[19].mxu1 }
 0x667   :  { %v1096_v8 = vpop.f32.mrb[20].mxu0 }
 0x668   :  { %v1686_v54 = vpop.f32.mrb[21].mxu0 }
 0x669   :  { %v1099_v53 = vpop.f32.mrb[22].mxu0 }
 0x66a   :  { %v1687_v5 = vpop.f32.mrb[23].mxu0 }
 0x66c   :  { %v1145_v15 = vpop.f32.mrb[20].mxu1 }
 0x66d   :  { %v1692_v50 = vpop.f32.mrb[21].mxu1 }
 0x66e   :  { %v1148_v16 = vpop.f32.mrb[22].mxu1 }
 0x66f   :  { %v1693_v11 = vpop.f32.mrb[23].mxu1 }
 0x673   :  { %v1194_v17 = vpop.f32.mrb[24].mxu0 }
 0x674   :  { %v1698_v19 = vpop.f32.mrb[25].mxu0 }
 0x675   :  { %v1197_v20 = vpop.f32.mrb[26].mxu0 }
 0x676   :  { %v1699_v24 = vpop.f32.mrb[27].mxu0 }
 0x6a1   :  { %v1243_v26 = vpop.f32.mrb[24].mxu1 }
 0x6a2   :  { %v1704_v9 = vpop.f32.mrb[25].mxu1 }
 0x6a3   :  { %v1246_v35 = vpop.f32.mrb[26].mxu1 }
 0x6a4   :  { %v1705_v25 = vpop.f32.mrb[27].mxu1 }
 0x6a5   :  { %v1580_v25 = vld [vmem:[%s2578_s5] ss:$0 sm:$0xff] }
 0x6b6   :  { %v1292_v57 = vpop.f32.mrb[28].mxu0 }
 0x6b7   :  { %v1769_v30 = vpack.i.bf16 %v1292_v57, %v1096_v8  ;;  %v1710_v31 = vpop.f32.mrb[29].mxu0 }
 0x6b8   :  { %v1295_v32 = vpop.f32.mrb[30].mxu0 }
 0x6b9   :  { %1770 = vrot.lane.b32.xlu0 %v1769_v30, %s1947_s19  ;;  %v1711_v56 = vpop.f32.mrb[31].mxu0 }
 0x6ba   :  { %v1341_v55 = vpop.f32.mrb[28].mxu1 }
 0x6bb   :  { %v1774_v33 = vpack.i.bf16 %v1341_v55, %v1145_v15  ;;  %v1716_v62 = vpop.f32.mrb[29].mxu1 }
 0x6bc   :  { %v1344_v34 = vpop.f32.mrb[30].mxu1 }
 0x6bd   :  { %1775 = vrot.lane.b32.xlu1 %v1774_v33, %s1963_s8  ;;  %v1717_v37 = vpop.f32.mrb[31].mxu1 }
 0x6be   :  { %v1390_v39 = vpop.f32.mrb[32].mxu0 }
 0x6bf   :  { %v1779_v3 = vpack.i.bf16 %v1390_v39, %v1194_v17  ;;  %v1722_v36 = vpop.f32.mrb[33].mxu0 }
 0x6c0   :  { %v1393_v14 = vpop.f32.mrb[34].mxu0 }
 0x6c1   :  { %1780 = vrot.lane.b32.xlu0 %v1779_v3, %s1964_s0  ;;  %v1723_v38 = vpop.f32.mrb[35].mxu0 }
 0x72b   :  { %v1771_v13 = vpop.permute.xlu0 %1770 }
 0x72c   :  { %v1773_v46 = vunpack.i.h.bf16 %v1771_v13  ;;  %v1772_v48 = vunpack.i.l.bf16 %v1771_v13 }
 0x72e   :  { %v1408_v21 = vsel %vm204_vm2, %v1047_v43, %v1772_v48  ;;  %v1425_v23 = vsel %vm204_vm2, %v1243_v26, %v1773_v46  ;;  %v1579_v26 = vld [vmem:[%s2577_s4] ss:$0 sm:$0xff] }
 0x72f   :  { %v1776_v45 = vpop.permute.xlu1 %1775 }
 0x730   :  { %v1778_v10 = vunpack.i.h.bf16 %v1776_v45  ;;  %v1777_v18 = vunpack.i.l.bf16 %v1776_v45 }
 0x732   :  { %v1426_v44 = vsel %vm1409_vm12, %v1425_v23, %v1778_v10  ;;  %v1410_v42 = vsel %vm1409_vm12, %v1408_v21, %v1777_v18 }
 0x733   :  { %v1781_v12 = vpop.permute.xlu0 %1780 }
 0x734   :  { %v1783_v22 = vunpack.i.h.bf16 %v1781_v12  ;;  %v1782_v51 = vunpack.i.l.bf16 %v1781_v12 }
 0x736   :  { %v1412_v47 = vsel %vm1411_vm13, %v1410_v42, %v1782_v51  ;;  %v1427_v61 = vsel %vm1411_vm13, %v1426_v44, %v1783_v22 }
 0x737   :  { %v1428_v41 = vpack.c.bf16 %v1427_v61, %v1412_v47 }
 0x739   :  { %1729 = vmatmul.mubr.msk.bf16.vlgmr.msra.gmra.mrb[32].mxu1 %vm100_vm0, %v1428_v41 }
 0x80c   :  { %v1482_v27 = vpop.f32.mrb[32].mxu1 }
 0x80d   :  { %v1483_v58 = vadd.f32 %v1824_v52, %v1482_v27  ;;  %v1730_v59 = vpop.f32.mrb[33].mxu1 }
 0x80e   :  { %v1485_v60 = vpop.f32.mrb[34].mxu1 }
 0x80f   :  { %v1486_v49 = vadd.f32 %v1825_v40, %v1485_v60  ;;  %v1731_v63 = vpop.f32.mrb[35].mxu1  ;;  %v1489_v0 = vsel %vm100_vm0, %v1483_v58, 0.0 }
 0x810   :  { %1490 = vadd.xlane.f32.xlu1 %v1489_v0 }
 0x811   :  { %v1492_v1 = vsel %vm100_vm0, %v1486_v49, 0.0 }
 0x812   :  { %1493 = vadd.xlane.f32.xlu0 %v1492_v1 }
 0x89d   :  { %v1491_v2 = vpop.xlane.xlu1 %1490 }
 0x89e   :  { %v1496_v43 = vmul.f32 0.03125, %v1491_v2 }
 0x89f   :  { %v1494_v4 = vpop.xlane.xlu0 %1493 }
 0x8a0   :  { %v1498_v6 = vsub.f32 %v1483_v58, %v1496_v43  ;;  %v1497_v7 = vmul.f32 0.03125, %v1494_v4 }
 0x8a2   :  { %v1499_v8 = vsub.f32 %v1486_v49, %v1497_v7  ;;  %v1500_v54 = vmul.f32 %v1498_v6, %v1498_v6 }
 0x8a4   :  { %v1502_v53 = vsel %vm100_vm0, %v1500_v54, 0.0  ;;  %v1501_v5 = vmul.f32 %v1499_v8, %v1499_v8 }
 0x8a5   :  { %1503 = vadd.xlane.f32.xlu0 %v1502_v53 }
 0x8a6   :  { %v1505_v15 = vsel %vm100_vm0, %v1501_v5, 0.0 }
 0x8a7   :  { %1506 = vadd.xlane.f32.xlu1 %v1505_v15 }
 0x932   :  { %v1504_v50 = vpop.xlane.xlu0 %1503 }
 0x933   :  { %v1508_v16 = vmul.f32 0.03125, %v1504_v50 }
 0x934   :  { %v1507_v11 = vpop.xlane.xlu1 %1506 }
 0x935   :  { %v1510_v17 = vadd.f32 1e-05, %v1508_v16  ;;  %v1509_v19 = vmul.f32 0.03125, %v1507_v11 }
 0x937   :  { %1820 = vrsqrt.f32 %v1510_v17  ;;  %v1511_v20 = vadd.f32 1e-05, %v1509_v19 }
 0x939   :  { %1822 = vrsqrt.f32 %v1511_v20 }
 0x941   :  { %v1821_v24 = vpop.eup %1820 }
 0x942   :  { %v1514_v9 = vmul.f32 %v1821_v24, %v1498_v6 }
 0x943   :  { %v1823_v35 = vpop.eup %1822 }
 0x944   :  { %v1515_v28 = vmul.f32 %v1823_v35, %v1499_v8  ;;  %v1523_v29 = vmul.f32 %v1579_v26, %v1514_v9 }
 0x946   :  { %v1524_v57 = vmul.f32 %v1579_v26, %v1515_v28  ;;  %v1532_v30 = vadd.f32 %v1580_v25, %v1523_v29 }
 0x948   :  { %v1533_v31 = vadd.f32 %v1580_v25, %v1524_v57  ;;  %1534 = vst.msk [vmem:[#allocation10] sm:$0xff] %vm100_vm0, %v1532_v30 }
 0x94a   :  { %1536 = vst.msk [vmem:[#allocation10 + $0x8] sm:$0xff] %vm100_vm0, %v1533_v31 }
 0x94b   :  { %1925 = shalt.err (!%p1922_p8)
}
 0x94c   :  { %s1926_s15 = scalar_lea.hbm %s2579_s6, 256 }
 0x94d   :  { %p1927_p9 = scmp.ne.s32.totalorder %s2579_s6, %s1926_s15  ;;  %p1930_p10 = scmp.lt.u32.totalorder %s1926_s15, %s2579_s6 }
 0x94f   :  { %p1932_p11 = pnand %p1930_p10, %p1927_p9 }
 0x951   :  { %1935 = shalt.err (!%p1932_p11)
}
 0x952   :  { %1548 = dma.vmem_to_hbm [thread:$0]  %s1543_s13, 256, %s2579_s6, [#allocation4], %s1946_s1, %s1946_s1, %s1947_s19  }
 0x953   :  { %1942 = dma.done.wait [#allocation4], 256  }
 0x954   :  { %1943 = vsyncadd [#allocation4], 4294967040 }
 0x955   :  { %1552 = vsyncpa [#allocation3], 1 }
 0x956   :  { %1553 = vsyncpa [#allocation6], 1 }
 0x957   :  { %1554 = vsyncpa [#allocation9], 1 }
 0x958   :  { %1555 = vsyncpa [#allocation4], 1 }

</bundles_post_ra>
